<compile_context>
chip_gen: v6e
topology: v6e:2x2x1
jax: 0.10.0
libtpu: 0.0.40
codegen_flags: <defaults>
</compile_context>

<pallas_src>
import functools

import jax
import jax.numpy as jnp
from jax import lax
from jax.experimental import pallas as pl
from jax.experimental.pallas import tpu as pltpu


def _pick_spatial_block(P, cap=2048):
    """Largest spatial block satisfying the TPU lane rule: the whole dim, or a
    multiple of 128 that divides it.  Capped so tiles stay small on v7x."""
    if P <= cap:
        return P
    for bp in range(cap - cap % 128, 0, -128):
        if P % bp == 0:
            return bp
    return P


def _stem_conv_kernel(taps_ref, w1t_ref, wt_ref, z_ref, ssum_ref, ssq_ref, *,
                      T, T_out, kt, st_t, p_t):
    """Spatial conv (one K=kh*kw*Cin bf16 matmul per real frame) + depthwise
    temporal conv + per-channel partial (sum, sum_sq) for BatchNorm."""
    cout = z_ref.shape[2]
    bp = z_ref.shape[3]

    w1t = w1t_ref[...]                                   # (Cout, K1) bf16, hoisted
    acc = [None] * T_out
    for t_in in range(T):                                # only real frames (padding skipped)
        y_t = jnp.dot(w1t, taps_ref[0, t_in],
                      preferred_element_type=jnp.float32)        # (Cout, bp) f32
        for k in range(kt):                              # static temporal tap -> output frame map
            num = t_in + p_t - k
            if num % st_t != 0:
                continue
            t_out = num // st_t
            if 0 <= t_out < T_out:
                c = wt_ref[k] * y_t                      # (Cout,1)*(Cout,bp) -> (Cout,bp)
                acc[t_out] = c if acc[t_out] is None else acc[t_out] + c

    s = jnp.zeros((cout, 1), jnp.float32)
    ss = jnp.zeros((cout, 1), jnp.float32)
    for t_out in range(T_out):
        a = acc[t_out]
        if a is None:                                    # frame fed only by zero padding
            a = jnp.zeros((cout, bp), jnp.float32)
        z_ref[0, t_out] = a                              # lane-dense store along spatial block
        s = s + jnp.sum(a, axis=1, keepdims=True)
        ss = ss + jnp.sum(a * a, axis=1, keepdims=True)
    ssum_ref[0, 0] = s                                   # (Cout, 1) partial sum
    ssq_ref[0, 0] = ss                                   # (Cout, 1) partial sum of squares


def _bn_relu_kernel(z_ref, a_ref, b_ref, o_ref):
    """Fused BN affine + ReLU: out = max(z * a + b, 0)."""
    o_ref[...] = jnp.maximum(z_ref[...] * a_ref[...] + b_ref[...], 0.0).astype(o_ref.dtype)


def x3d_stem_forward(x, w_xy, w_t, gamma, beta, kernel, stride, padding, eps=1e-5):
    """x: (N, Cin, T, H, W) NCTHW.  Returns (N, Cout, T_out, Ho, Wo)."""
    kt, kh, kw = kernel
    st_t, s_h, s_w = stride
    p_t, p_h, p_w = padding
    N, Cin, T, H, W = x.shape
    Cout = w_xy.shape[0]
    Ho = (H + 2 * p_h - kh) // s_h + 1
    Wo = (W + 2 * p_w - kw) // s_w + 1
    T_out = (T + 2 * p_t - kt) // st_t + 1
    P = Ho * Wo
    K1 = kh * kw * Cin

    # ---- glue: im2col with taps folded into the contraction axis, bf16 ----
    x_t = jnp.transpose(x, (0, 2, 1, 3, 4))                          # (N, T, Cin, H, W)
    x_p = jnp.pad(x_t, ((0, 0), (0, 0), (0, 0), (p_h, p_h), (p_w, p_w)))
    taps = []
    for i in range(kh):
        for j in range(kw):
            sl = x_p[:, :, :, i:i + s_h * (Ho - 1) + 1:s_h,
                     j:j + s_w * (Wo - 1) + 1:s_w]                   # (N, T, Cin, Ho, Wo)
            taps.append(sl.reshape(N, T, Cin, P))
    taps = jnp.concatenate(taps, axis=2).astype(jnp.bfloat16)        # (N, T, K1, P)

    # ---- glue: parameter repacking (tap order = (kh, kw, cin)) ----
    w1t = jnp.transpose(w_xy[:, :, 0, :, :], (0, 2, 3, 1)).reshape(Cout, K1)
    w1t = w1t.astype(jnp.bfloat16)                                   # (Cout, K1)
    wt = jnp.transpose(w_t[:, 0, :, 0, 0], (1, 0)).reshape(kt, Cout, 1)
    wt = wt.astype(jnp.float32)

    bp = _pick_spatial_block(P)
    nP = P // bp

    cparams = pltpu.CompilerParams(
        dimension_semantics=("parallel", "parallel"),
        vmem_limit_bytes=48 * 1024 * 1024,
    )

    kern1 = functools.partial(_stem_conv_kernel, T=T, T_out=T_out,
                              kt=kt, st_t=st_t, p_t=p_t)
    z, ssum, ssq = pl.pallas_call(
        kern1,
        grid=(N, nP),
        in_specs=[
            pl.BlockSpec((1, T, K1, bp), lambda n, p: (n, 0, 0, p)),
            pl.BlockSpec((Cout, K1), lambda n, p: (0, 0)),
            pl.BlockSpec((kt, Cout, 1), lambda n, p: (0, 0, 0)),
        ],
        out_specs=(
            pl.BlockSpec((1, T_out, Cout, bp), lambda n, p: (n, 0, 0, p)),
            pl.BlockSpec((1, 1, Cout, 1), lambda n, p: (n, p, 0, 0)),
            pl.BlockSpec((1, 1, Cout, 1), lambda n, p: (n, p, 0, 0)),
        ),
        out_shape=(
            jax.ShapeDtypeStruct((N, T_out, Cout, P), jnp.float32),
            jax.ShapeDtypeStruct((N, nP, Cout, 1), jnp.float32),
            jax.ShapeDtypeStruct((N, nP, Cout, 1), jnp.float32),
        ),
        compiler_params=cparams,
    )(taps, w1t, wt)

    # ---- tiny O(Cout) BN finalize (fused affine) ----
    cnt = float(N * T_out * P)
    mean = jnp.sum(ssum, axis=(0, 1))[:, 0] / cnt
    ex2 = jnp.sum(ssq, axis=(0, 1))[:, 0] / cnt
    var = jnp.maximum(ex2 - mean * mean, 0.0)
    a = gamma.astype(jnp.float32) * lax.rsqrt(var + eps)
    b = beta.astype(jnp.float32) - mean * a
    a2 = a.reshape(Cout, 1)
    b2 = b.reshape(Cout, 1)

    # ---- pass 2: tiled fused affine + ReLU ----
    out = pl.pallas_call(
        _bn_relu_kernel,
        grid=(N, nP),
        in_specs=[
            pl.BlockSpec((1, T_out, Cout, bp), lambda n, p: (n, 0, 0, p)),
            pl.BlockSpec((Cout, 1), lambda n, p: (0, 0)),
            pl.BlockSpec((Cout, 1), lambda n, p: (0, 0)),
        ],
        out_specs=pl.BlockSpec((1, T_out, Cout, bp), lambda n, p: (n, 0, 0, p)),
        out_shape=jax.ShapeDtypeStruct((N, T_out, Cout, P), jnp.float32),
        compiler_params=cparams,
    )(z, a2, b2)

    # ---- glue: back to PyTorch NCTHW ----
    out = out.reshape(N, T_out, Cout, Ho, Wo)
    return jnp.transpose(out, (0, 2, 1, 3, 4))


def x3d_stem_reference(x, w_xy, w_t, gamma, beta, kernel, stride, padding, eps=1e-5):
    """Pure-JAX reference (lax.conv) of the same forward, NCTHW in/out."""
    kt, kh, kw = kernel
    st_t, s_h, s_w = stride
    p_t, p_h, p_w = padding
    Cout = w_xy.shape[0]
    dn = ("NCDHW", "OIDHW", "NCDHW")
    y1 = lax.conv_general_dilated(
        x, w_xy, window_strides=(1, s_h, s_w),
        padding=[(0, 0), (p_h, p_h), (p_w, p_w)], dimension_numbers=dn)
    y2 = lax.conv_general_dilated(
        y1, w_t, window_strides=(st_t, 1, 1),
        padding=[(p_t, p_t), (0, 0), (0, 0)],
        dimension_numbers=dn, feature_group_count=Cout)
    mean = jnp.mean(y2, axis=(0, 2, 3, 4), keepdims=True)
    var = jnp.mean((y2 - mean) ** 2, axis=(0, 2, 3, 4), keepdims=True)
    yn = (y2 - mean) * lax.rsqrt(var + eps)
    yb = yn * gamma.reshape(1, -1, 1, 1, 1) + beta.reshape(1, -1, 1, 1, 1)
    return jnp.maximum(yb, 0.0)


if __name__ == "__main__":
    key = jax.random.PRNGKey(0)
    kx, k1, k2, k3, k4 = jax.random.split(key, 5)

    # Small shapes consistent with the X3D stem (RGB in, temporal stride 1, spatial stride 2).
    N, Cin, T, H, W = 2, 3, 8, 16, 16
    Cout = 16
    kernel = (5, 3, 3)
    stride = (1, 2, 2)
    padding = (2, 1, 1)
    eps = 1e-5

    x = jax.random.normal(kx, (N, Cin, T, H, W), jnp.float32)
    w_xy = 0.1 * jax.random.normal(k1, (Cout, Cin, 1, kernel[1], kernel[2]), jnp.float32)
    w_t = 0.1 * jax.random.normal(k2, (Cout, 1, kernel[0], 1, 1), jnp.float32)
    gamma = 1.0 + 0.1 * jax.random.normal(k3, (Cout,), jnp.float32)
    beta = 0.1 * jax.random.normal(k4, (Cout,), jnp.float32)

    out = x3d_stem_forward(x, w_xy, w_t, gamma, beta, kernel, stride, padding, eps)
    out = jax.block_until_ready(out)

    # Exact-math check: reference sees the same bf16-rounded conv_xy inputs the MXU sees.
    x_q = x.astype(jnp.bfloat16).astype(jnp.float32)
    w_xy_q = w_xy.astype(jnp.bfloat16).astype(jnp.float32)
    ref_q = x3d_stem_reference(x_q, w_xy_q, w_t, gamma, beta, kernel, stride, padding, eps)
    assert out.shape == ref_q.shape, (out.shape, ref_q.shape)
    err_q = float(jnp.max(jnp.abs(out - ref_q)))
    assert err_q < 2e-3, f"max abs err vs bf16-matched ref {err_q}"

    # Sanity check vs the pure fp32 reference (bounded bf16 input-quantization error).
    ref = x3d_stem_reference(x, w_xy, w_t, gamma, beta, kernel, stride, padding, eps)
    err = float(jnp.max(jnp.abs(out - ref)))
    assert err < 1e-1, f"max abs err vs fp32 ref {err}"

    print("KERNEL_OK")
</pallas_src>

<mosaic_0001>
module attributes {stable_mosaic.version = 11 : i64} {
  func.func @_stem_conv_kernel(%arg0: i32, %arg1: i32, %arg2: memref<1x8x27x64xbf16, #tpu.memory_space<vmem>>, %arg3: memref<16x27xbf16, #tpu.memory_space<vmem>>, %arg4: memref<5x16x1xf32, #tpu.memory_space<vmem>>, %arg5: memref<1x8x16x64xf32, #tpu.memory_space<vmem>>, %arg6: memref<1x1x16x1xf32, #tpu.memory_space<vmem>>, %arg7: memref<1x1x16x1xf32, #tpu.memory_space<vmem>>) attributes {dimension_semantics = [#tpu.dimension_semantics<parallel>, #tpu.dimension_semantics<parallel>], iteration_bounds = array<i64: 2, 1>, scalar_prefetch = 0 : i64, scratch_operands = 0 : i64, tpu.core_type = #tpu.core_type<tc>, window_params = [{transform_indices = @transform_0, window_bounds = array<i64: 1, 8, 27, 64>}, {pipeline_mode = #tpu.pipeline_mode<synchronous>, transform_indices = @transform_1, window_bounds = array<i64: 16, 27>}, {pipeline_mode = #tpu.pipeline_mode<synchronous>, transform_indices = @transform_2, window_bounds = array<i64: 5, 16, 1>}, {transform_indices = @transform_3, window_bounds = array<i64: 1, 8, 16, 64>}, {transform_indices = @transform_4, window_bounds = array<i64: 1, 1, 16, 1>}, {transform_indices = @transform_5, window_bounds = array<i64: 1, 1, 16, 1>}]} {
    %c0 = arith.constant 0 : index
    %c0_0 = arith.constant 0 : index
    %0 = vector.load %arg3[%c0, %c0_0] : memref<16x27xbf16, #tpu.memory_space<vmem>>, vector<16x27xbf16>
    %c0_1 = arith.constant 0 : index
    %c0_2 = arith.constant 0 : index
    %c0_3 = arith.constant 0 : index
    %c0_4 = arith.constant 0 : index
    %1 = vector.load %arg2[%c0_1, %c0_2, %c0_3, %c0_4] : memref<1x8x27x64xbf16, #tpu.memory_space<vmem>>, vector<1x1x27x64xbf16>
    %2 = vector.shape_cast %1 : vector<1x1x27x64xbf16> to vector<27x64xbf16>
    %cst = arith.constant dense<0.000000e+00> : vector<16x64xf32>
    %3 = tpu.matmul %0, %2, %cst {dimension_numbers = #tpu.dot_dimension_numbers<[1], [0], [0], [1], [0, 0, 1, 1], [], []>} : vector<16x27xbf16>, vector<27x64xbf16>, vector<16x64xf32> -> vector<16x64xf32>
    %c0_5 = arith.constant 0 : index
    %c0_6 = arith.constant 0 : index
    %c0_7 = arith.constant 0 : index
    %4 = vector.load %arg4[%c0_5, %c0_6, %c0_7] : memref<5x16x1xf32, #tpu.memory_space<vmem>>, vector<1x16x1xf32>
    %5 = vector.shape_cast %4 : vector<1x16x1xf32> to vector<16x1xf32>
    %6 = vector.broadcast %5 : vector<16x1xf32> to vector<16x64xf32>
    %7 = arith.mulf %6, %3 : vector<16x64xf32>
    %c1 = arith.constant 1 : index
    %c0_8 = arith.constant 0 : index
    %c0_9 = arith.constant 0 : index
    %8 = vector.load %arg4[%c1, %c0_8, %c0_9] : memref<5x16x1xf32, #tpu.memory_space<vmem>>, vector<1x16x1xf32>
    %9 = vector.shape_cast %8 : vector<1x16x1xf32> to vector<16x1xf32>
    %10 = vector.broadcast %9 : vector<16x1xf32> to vector<16x64xf32>
    %11 = arith.mulf %10, %3 : vector<16x64xf32>
    %c2 = arith.constant 2 : index
    %c0_10 = arith.constant 0 : index
    %c0_11 = arith.constant 0 : index
    %12 = vector.load %arg4[%c2, %c0_10, %c0_11] : memref<5x16x1xf32, #tpu.memory_space<vmem>>, vector<1x16x1xf32>
    %13 = vector.shape_cast %12 : vector<1x16x1xf32> to vector<16x1xf32>
    %14 = vector.broadcast %13 : vector<16x1xf32> to vector<16x64xf32>
    %15 = arith.mulf %14, %3 : vector<16x64xf32>
    %c0_12 = arith.constant 0 : index
    %c1_13 = arith.constant 1 : index
    %c0_14 = arith.constant 0 : index
    %c0_15 = arith.constant 0 : index
    %16 = vector.load %arg2[%c0_12, %c1_13, %c0_14, %c0_15] : memref<1x8x27x64xbf16, #tpu.memory_space<vmem>>, vector<1x1x27x64xbf16>
    %17 = vector.shape_cast %16 : vector<1x1x27x64xbf16> to vector<27x64xbf16>
    %cst_16 = arith.constant dense<0.000000e+00> : vector<16x64xf32>
    %18 = tpu.matmul %0, %17, %cst_16 {dimension_numbers = #tpu.dot_dimension_numbers<[1], [0], [0], [1], [0, 0, 1, 1], [], []>} : vector<16x27xbf16>, vector<27x64xbf16>, vector<16x64xf32> -> vector<16x64xf32>
    %c0_17 = arith.constant 0 : index
    %c0_18 = arith.constant 0 : index
    %c0_19 = arith.constant 0 : index
    %19 = vector.load %arg4[%c0_17, %c0_18, %c0_19] : memref<5x16x1xf32, #tpu.memory_space<vmem>>, vector<1x16x1xf32>
    %20 = vector.shape_cast %19 : vector<1x16x1xf32> to vector<16x1xf32>
    %21 = vector.broadcast %20 : vector<16x1xf32> to vector<16x64xf32>
    %22 = arith.mulf %21, %18 : vector<16x64xf32>
    %c1_20 = arith.constant 1 : index
    %c0_21 = arith.constant 0 : index
    %c0_22 = arith.constant 0 : index
    %23 = vector.load %arg4[%c1_20, %c0_21, %c0_22] : memref<5x16x1xf32, #tpu.memory_space<vmem>>, vector<1x16x1xf32>
    %24 = vector.shape_cast %23 : vector<1x16x1xf32> to vector<16x1xf32>
    %25 = vector.broadcast %24 : vector<16x1xf32> to vector<16x64xf32>
    %26 = arith.mulf %25, %18 : vector<16x64xf32>
    %27 = arith.addf %7, %26 : vector<16x64xf32>
    %c2_23 = arith.constant 2 : index
    %c0_24 = arith.constant 0 : index
    %c0_25 = arith.constant 0 : index
    %28 = vector.load %arg4[%c2_23, %c0_24, %c0_25] : memref<5x16x1xf32, #tpu.memory_space<vmem>>, vector<1x16x1xf32>
    %29 = vector.shape_cast %28 : vector<1x16x1xf32> to vector<16x1xf32>
    %30 = vector.broadcast %29 : vector<16x1xf32> to vector<16x64xf32>
    %31 = arith.mulf %30, %18 : vector<16x64xf32>
    %32 = arith.addf %11, %31 : vector<16x64xf32>
    %c3 = arith.constant 3 : index
    %c0_26 = arith.constant 0 : index
    %c0_27 = arith.constant 0 : index
    %33 = vector.load %arg4[%c3, %c0_26, %c0_27] : memref<5x16x1xf32, #tpu.memory_space<vmem>>, vector<1x16x1xf32>
    %34 = vector.shape_cast %33 : vector<1x16x1xf32> to vector<16x1xf32>
    %35 = vector.broadcast %34 : vector<16x1xf32> to vector<16x64xf32>
    %36 = arith.mulf %35, %18 : vector<16x64xf32>
    %37 = arith.addf %15, %36 : vector<16x64xf32>
    %c0_28 = arith.constant 0 : index
    %c2_29 = arith.constant 2 : index
    %c0_30 = arith.constant 0 : index
    %c0_31 = arith.constant 0 : index
    %38 = vector.load %arg2[%c0_28, %c2_29, %c0_30, %c0_31] : memref<1x8x27x64xbf16, #tpu.memory_space<vmem>>, vector<1x1x27x64xbf16>
    %39 = vector.shape_cast %38 : vector<1x1x27x64xbf16> to vector<27x64xbf16>
    %cst_32 = arith.constant dense<0.000000e+00> : vector<16x64xf32>
    %40 = tpu.matmul %0, %39, %cst_32 {dimension_numbers = #tpu.dot_dimension_numbers<[1], [0], [0], [1], [0, 0, 1, 1], [], []>} : vector<16x27xbf16>, vector<27x64xbf16>, vector<16x64xf32> -> vector<16x64xf32>
    %c0_33 = arith.constant 0 : index
    %c0_34 = arith.constant 0 : index
    %c0_35 = arith.constant 0 : index
    %41 = vector.load %arg4[%c0_33, %c0_34, %c0_35] : memref<5x16x1xf32, #tpu.memory_space<vmem>>, vector<1x16x1xf32>
    %42 = vector.shape_cast %41 : vector<1x16x1xf32> to vector<16x1xf32>
    %43 = vector.broadcast %42 : vector<16x1xf32> to vector<16x64xf32>
    %44 = arith.mulf %43, %40 : vector<16x64xf32>
    %c1_36 = arith.constant 1 : index
    %c0_37 = arith.constant 0 : index
    %c0_38 = arith.constant 0 : index
    %45 = vector.load %arg4[%c1_36, %c0_37, %c0_38] : memref<5x16x1xf32, #tpu.memory_space<vmem>>, vector<1x16x1xf32>
    %46 = vector.shape_cast %45 : vector<1x16x1xf32> to vector<16x1xf32>
    %47 = vector.broadcast %46 : vector<16x1xf32> to vector<16x64xf32>
    %48 = arith.mulf %47, %40 : vector<16x64xf32>
    %49 = arith.addf %22, %48 : vector<16x64xf32>
    %c2_39 = arith.constant 2 : index
    %c0_40 = arith.constant 0 : index
    %c0_41 = arith.constant 0 : index
    %50 = vector.load %arg4[%c2_39, %c0_40, %c0_41] : memref<5x16x1xf32, #tpu.memory_space<vmem>>, vector<1x16x1xf32>
    %51 = vector.shape_cast %50 : vector<1x16x1xf32> to vector<16x1xf32>
    %52 = vector.broadcast %51 : vector<16x1xf32> to vector<16x64xf32>
    %53 = arith.mulf %52, %40 : vector<16x64xf32>
    %54 = arith.addf %27, %53 : vector<16x64xf32>
    %c3_42 = arith.constant 3 : index
    %c0_43 = arith.constant 0 : index
    %c0_44 = arith.constant 0 : index
    %55 = vector.load %arg4[%c3_42, %c0_43, %c0_44] : memref<5x16x1xf32, #tpu.memory_space<vmem>>, vector<1x16x1xf32>
    %56 = vector.shape_cast %55 : vector<1x16x1xf32> to vector<16x1xf32>
    %57 = vector.broadcast %56 : vector<16x1xf32> to vector<16x64xf32>
    %58 = arith.mulf %57, %40 : vector<16x64xf32>
    %59 = arith.addf %32, %58 : vector<16x64xf32>
    %c4 = arith.constant 4 : index
    %c0_45 = arith.constant 0 : index
    %c0_46 = arith.constant 0 : index
    %60 = vector.load %arg4[%c4, %c0_45, %c0_46] : memref<5x16x1xf32, #tpu.memory_space<vmem>>, vector<1x16x1xf32>
    %61 = vector.shape_cast %60 : vector<1x16x1xf32> to vector<16x1xf32>
    %62 = vector.broadcast %61 : vector<16x1xf32> to vector<16x64xf32>
    %63 = arith.mulf %62, %40 : vector<16x64xf32>
    %64 = arith.addf %37, %63 : vector<16x64xf32>
    %c0_47 = arith.constant 0 : index
    %c3_48 = arith.constant 3 : index
    %c0_49 = arith.constant 0 : index
    %c0_50 = arith.constant 0 : index
    %65 = vector.load %arg2[%c0_47, %c3_48, %c0_49, %c0_50] : memref<1x8x27x64xbf16, #tpu.memory_space<vmem>>, vector<1x1x27x64xbf16>
    %66 = vector.shape_cast %65 : vector<1x1x27x64xbf16> to vector<27x64xbf16>
    %cst_51 = arith.constant dense<0.000000e+00> : vector<16x64xf32>
    %67 = tpu.matmul %0, %66, %cst_51 {dimension_numbers = #tpu.dot_dimension_numbers<[1], [0], [0], [1], [0, 0, 1, 1], [], []>} : vector<16x27xbf16>, vector<27x64xbf16>, vector<16x64xf32> -> vector<16x64xf32>
    %c0_52 = arith.constant 0 : index
    %c0_53 = arith.constant 0 : index
    %c0_54 = arith.constant 0 : index
    %68 = vector.load %arg4[%c0_52, %c0_53, %c0_54] : memref<5x16x1xf32, #tpu.memory_space<vmem>>, vector<1x16x1xf32>
    %69 = vector.shape_cast %68 : vector<1x16x1xf32> to vector<16x1xf32>
    %70 = vector.broadcast %69 : vector<16x1xf32> to vector<16x64xf32>
    %71 = arith.mulf %70, %67 : vector<16x64xf32>
    %c1_55 = arith.constant 1 : index
    %c0_56 = arith.constant 0 : index
    %c0_57 = arith.constant 0 : index
    %72 = vector.load %arg4[%c1_55, %c0_56, %c0_57] : memref<5x16x1xf32, #tpu.memory_space<vmem>>, vector<1x16x1xf32>
    %73 = vector.shape_cast %72 : vector<1x16x1xf32> to vector<16x1xf32>
    %74 = vector.broadcast %73 : vector<16x1xf32> to vector<16x64xf32>
    %75 = arith.mulf %74, %67 : vector<16x64xf32>
    %76 = arith.addf %44, %75 : vector<16x64xf32>
    %c2_58 = arith.constant 2 : index
    %c0_59 = arith.constant 0 : index
    %c0_60 = arith.constant 0 : index
    %77 = vector.load %arg4[%c2_58, %c0_59, %c0_60] : memref<5x16x1xf32, #tpu.memory_space<vmem>>, vector<1x16x1xf32>
    %78 = vector.shape_cast %77 : vector<1x16x1xf32> to vector<16x1xf32>
    %79 = vector.broadcast %78 : vector<16x1xf32> to vector<16x64xf32>
    %80 = arith.mulf %79, %67 : vector<16x64xf32>
    %81 = arith.addf %49, %80 : vector<16x64xf32>
    %c3_61 = arith.constant 3 : index
    %c0_62 = arith.constant 0 : index
    %c0_63 = arith.constant 0 : index
    %82 = vector.load %arg4[%c3_61, %c0_62, %c0_63] : memref<5x16x1xf32, #tpu.memory_space<vmem>>, vector<1x16x1xf32>
    %83 = vector.shape_cast %82 : vector<1x16x1xf32> to vector<16x1xf32>
    %84 = vector.broadcast %83 : vector<16x1xf32> to vector<16x64xf32>
    %85 = arith.mulf %84, %67 : vector<16x64xf32>
    %86 = arith.addf %54, %85 : vector<16x64xf32>
    %c4_64 = arith.constant 4 : index
    %c0_65 = arith.constant 0 : index
    %c0_66 = arith.constant 0 : index
    %87 = vector.load %arg4[%c4_64, %c0_65, %c0_66] : memref<5x16x1xf32, #tpu.memory_space<vmem>>, vector<1x16x1xf32>
    %88 = vector.shape_cast %87 : vector<1x16x1xf32> to vector<16x1xf32>
    %89 = vector.broadcast %88 : vector<16x1xf32> to vector<16x64xf32>
    %90 = arith.mulf %89, %67 : vector<16x64xf32>
    %91 = arith.addf %59, %90 : vector<16x64xf32>
    %c0_67 = arith.constant 0 : index
    %c4_68 = arith.constant 4 : index
    %c0_69 = arith.constant 0 : index
    %c0_70 = arith.constant 0 : index
    %92 = vector.load %arg2[%c0_67, %c4_68, %c0_69, %c0_70] : memref<1x8x27x64xbf16, #tpu.memory_space<vmem>>, vector<1x1x27x64xbf16>
    %93 = vector.shape_cast %92 : vector<1x1x27x64xbf16> to vector<27x64xbf16>
    %cst_71 = arith.constant dense<0.000000e+00> : vector<16x64xf32>
    %94 = tpu.matmul %0, %93, %cst_71 {dimension_numbers = #tpu.dot_dimension_numbers<[1], [0], [0], [1], [0, 0, 1, 1], [], []>} : vector<16x27xbf16>, vector<27x64xbf16>, vector<16x64xf32> -> vector<16x64xf32>
    %c0_72 = arith.constant 0 : index
    %c0_73 = arith.constant 0 : index
    %c0_74 = arith.constant 0 : index
    %95 = vector.load %arg4[%c0_72, %c0_73, %c0_74] : memref<5x16x1xf32, #tpu.memory_space<vmem>>, vector<1x16x1xf32>
    %96 = vector.shape_cast %95 : vector<1x16x1xf32> to vector<16x1xf32>
    %97 = vector.broadcast %96 : vector<16x1xf32> to vector<16x64xf32>
    %98 = arith.mulf %97, %94 : vector<16x64xf32>
    %c1_75 = arith.constant 1 : index
    %c0_76 = arith.constant 0 : index
    %c0_77 = arith.constant 0 : index
    %99 = vector.load %arg4[%c1_75, %c0_76, %c0_77] : memref<5x16x1xf32, #tpu.memory_space<vmem>>, vector<1x16x1xf32>
    %100 = vector.shape_cast %99 : vector<1x16x1xf32> to vector<16x1xf32>
    %101 = vector.broadcast %100 : vector<16x1xf32> to vector<16x64xf32>
    %102 = arith.mulf %101, %94 : vector<16x64xf32>
    %103 = arith.addf %71, %102 : vector<16x64xf32>
    %c2_78 = arith.constant 2 : index
    %c0_79 = arith.constant 0 : index
    %c0_80 = arith.constant 0 : index
    %104 = vector.load %arg4[%c2_78, %c0_79, %c0_80] : memref<5x16x1xf32, #tpu.memory_space<vmem>>, vector<1x16x1xf32>
    %105 = vector.shape_cast %104 : vector<1x16x1xf32> to vector<16x1xf32>
    %106 = vector.broadcast %105 : vector<16x1xf32> to vector<16x64xf32>
    %107 = arith.mulf %106, %94 : vector<16x64xf32>
    %108 = arith.addf %76, %107 : vector<16x64xf32>
    %c3_81 = arith.constant 3 : index
    %c0_82 = arith.constant 0 : index
    %c0_83 = arith.constant 0 : index
    %109 = vector.load %arg4[%c3_81, %c0_82, %c0_83] : memref<5x16x1xf32, #tpu.memory_space<vmem>>, vector<1x16x1xf32>
    %110 = vector.shape_cast %109 : vector<1x16x1xf32> to vector<16x1xf32>
    %111 = vector.broadcast %110 : vector<16x1xf32> to vector<16x64xf32>
    %112 = arith.mulf %111, %94 : vector<16x64xf32>
    %113 = arith.addf %81, %112 : vector<16x64xf32>
    %c4_84 = arith.constant 4 : index
    %c0_85 = arith.constant 0 : index
    %c0_86 = arith.constant 0 : index
    %114 = vector.load %arg4[%c4_84, %c0_85, %c0_86] : memref<5x16x1xf32, #tpu.memory_space<vmem>>, vector<1x16x1xf32>
    %115 = vector.shape_cast %114 : vector<1x16x1xf32> to vector<16x1xf32>
    %116 = vector.broadcast %115 : vector<16x1xf32> to vector<16x64xf32>
    %117 = arith.mulf %116, %94 : vector<16x64xf32>
    %118 = arith.addf %86, %117 : vector<16x64xf32>
    %c0_87 = arith.constant 0 : index
    %c5 = arith.constant 5 : index
    %c0_88 = arith.constant 0 : index
    %c0_89 = arith.constant 0 : index
    %119 = vector.load %arg2[%c0_87, %c5, %c0_88, %c0_89] : memref<1x8x27x64xbf16, #tpu.memory_space<vmem>>, vector<1x1x27x64xbf16>
    %120 = vector.shape_cast %119 : vector<1x1x27x64xbf16> to vector<27x64xbf16>
    %cst_90 = arith.constant dense<0.000000e+00> : vector<16x64xf32>
    %121 = tpu.matmul %0, %120, %cst_90 {dimension_numbers = #tpu.dot_dimension_numbers<[1], [0], [0], [1], [0, 0, 1, 1], [], []>} : vector<16x27xbf16>, vector<27x64xbf16>, vector<16x64xf32> -> vector<16x64xf32>
    %c0_91 = arith.constant 0 : index
    %c0_92 = arith.constant 0 : index
    %c0_93 = arith.constant 0 : index
    %122 = vector.load %arg4[%c0_91, %c0_92, %c0_93] : memref<5x16x1xf32, #tpu.memory_space<vmem>>, vector<1x16x1xf32>
    %123 = vector.shape_cast %122 : vector<1x16x1xf32> to vector<16x1xf32>
    %124 = vector.broadcast %123 : vector<16x1xf32> to vector<16x64xf32>
    %125 = arith.mulf %124, %121 : vector<16x64xf32>
    %c1_94 = arith.constant 1 : index
    %c0_95 = arith.constant 0 : index
    %c0_96 = arith.constant 0 : index
    %126 = vector.load %arg4[%c1_94, %c0_95, %c0_96] : memref<5x16x1xf32, #tpu.memory_space<vmem>>, vector<1x16x1xf32>
    %127 = vector.shape_cast %126 : vector<1x16x1xf32> to vector<16x1xf32>
    %128 = vector.broadcast %127 : vector<16x1xf32> to vector<16x64xf32>
    %129 = arith.mulf %128, %121 : vector<16x64xf32>
    %130 = arith.addf %98, %129 : vector<16x64xf32>
    %c2_97 = arith.constant 2 : index
    %c0_98 = arith.constant 0 : index
    %c0_99 = arith.constant 0 : index
    %131 = vector.load %arg4[%c2_97, %c0_98, %c0_99] : memref<5x16x1xf32, #tpu.memory_space<vmem>>, vector<1x16x1xf32>
    %132 = vector.shape_cast %131 : vector<1x16x1xf32> to vector<16x1xf32>
    %133 = vector.broadcast %132 : vector<16x1xf32> to vector<16x64xf32>
    %134 = arith.mulf %133, %121 : vector<16x64xf32>
    %135 = arith.addf %103, %134 : vector<16x64xf32>
    %c3_100 = arith.constant 3 : index
    %c0_101 = arith.constant 0 : index
    %c0_102 = arith.constant 0 : index
    %136 = vector.load %arg4[%c3_100, %c0_101, %c0_102] : memref<5x16x1xf32, #tpu.memory_space<vmem>>, vector<1x16x1xf32>
    %137 = vector.shape_cast %136 : vector<1x16x1xf32> to vector<16x1xf32>
    %138 = vector.broadcast %137 : vector<16x1xf32> to vector<16x64xf32>
    %139 = arith.mulf %138, %121 : vector<16x64xf32>
    %140 = arith.addf %108, %139 : vector<16x64xf32>
    %c4_103 = arith.constant 4 : index
    %c0_104 = arith.constant 0 : index
    %c0_105 = arith.constant 0 : index
    %141 = vector.load %arg4[%c4_103, %c0_104, %c0_105] : memref<5x16x1xf32, #tpu.memory_space<vmem>>, vector<1x16x1xf32>
    %142 = vector.shape_cast %141 : vector<1x16x1xf32> to vector<16x1xf32>
    %143 = vector.broadcast %142 : vector<16x1xf32> to vector<16x64xf32>
    %144 = arith.mulf %143, %121 : vector<16x64xf32>
    %145 = arith.addf %113, %144 : vector<16x64xf32>
    %c0_106 = arith.constant 0 : index
    %c6 = arith.constant 6 : index
    %c0_107 = arith.constant 0 : index
    %c0_108 = arith.constant 0 : index
    %146 = vector.load %arg2[%c0_106, %c6, %c0_107, %c0_108] : memref<1x8x27x64xbf16, #tpu.memory_space<vmem>>, vector<1x1x27x64xbf16>
    %147 = vector.shape_cast %146 : vector<1x1x27x64xbf16> to vector<27x64xbf16>
    %cst_109 = arith.constant dense<0.000000e+00> : vector<16x64xf32>
    %148 = tpu.matmul %0, %147, %cst_109 {dimension_numbers = #tpu.dot_dimension_numbers<[1], [0], [0], [1], [0, 0, 1, 1], [], []>} : vector<16x27xbf16>, vector<27x64xbf16>, vector<16x64xf32> -> vector<16x64xf32>
    %c1_110 = arith.constant 1 : index
    %c0_111 = arith.constant 0 : index
    %c0_112 = arith.constant 0 : index
    %149 = vector.load %arg4[%c1_110, %c0_111, %c0_112] : memref<5x16x1xf32, #tpu.memory_space<vmem>>, vector<1x16x1xf32>
    %150 = vector.shape_cast %149 : vector<1x16x1xf32> to vector<16x1xf32>
    %151 = vector.broadcast %150 : vector<16x1xf32> to vector<16x64xf32>
    %152 = arith.mulf %151, %148 : vector<16x64xf32>
    %153 = arith.addf %125, %152 : vector<16x64xf32>
    %c2_113 = arith.constant 2 : index
    %c0_114 = arith.constant 0 : index
    %c0_115 = arith.constant 0 : index
    %154 = vector.load %arg4[%c2_113, %c0_114, %c0_115] : memref<5x16x1xf32, #tpu.memory_space<vmem>>, vector<1x16x1xf32>
    %155 = vector.shape_cast %154 : vector<1x16x1xf32> to vector<16x1xf32>
    %156 = vector.broadcast %155 : vector<16x1xf32> to vector<16x64xf32>
    %157 = arith.mulf %156, %148 : vector<16x64xf32>
    %158 = arith.addf %130, %157 : vector<16x64xf32>
    %c3_116 = arith.constant 3 : index
    %c0_117 = arith.constant 0 : index
    %c0_118 = arith.constant 0 : index
    %159 = vector.load %arg4[%c3_116, %c0_117, %c0_118] : memref<5x16x1xf32, #tpu.memory_space<vmem>>, vector<1x16x1xf32>
    %160 = vector.shape_cast %159 : vector<1x16x1xf32> to vector<16x1xf32>
    %161 = vector.broadcast %160 : vector<16x1xf32> to vector<16x64xf32>
    %162 = arith.mulf %161, %148 : vector<16x64xf32>
    %163 = arith.addf %135, %162 : vector<16x64xf32>
    %c4_119 = arith.constant 4 : index
    %c0_120 = arith.constant 0 : index
    %c0_121 = arith.constant 0 : index
    %164 = vector.load %arg4[%c4_119, %c0_120, %c0_121] : memref<5x16x1xf32, #tpu.memory_space<vmem>>, vector<1x16x1xf32>
    %165 = vector.shape_cast %164 : vector<1x16x1xf32> to vector<16x1xf32>
    %166 = vector.broadcast %165 : vector<16x1xf32> to vector<16x64xf32>
    %167 = arith.mulf %166, %148 : vector<16x64xf32>
    %168 = arith.addf %140, %167 : vector<16x64xf32>
    %c0_122 = arith.constant 0 : index
    %c7 = arith.constant 7 : index
    %c0_123 = arith.constant 0 : index
    %c0_124 = arith.constant 0 : index
    %169 = vector.load %arg2[%c0_122, %c7, %c0_123, %c0_124] : memref<1x8x27x64xbf16, #tpu.memory_space<vmem>>, vector<1x1x27x64xbf16>
    %170 = vector.shape_cast %169 : vector<1x1x27x64xbf16> to vector<27x64xbf16>
    %cst_125 = arith.constant dense<0.000000e+00> : vector<16x64xf32>
    %171 = tpu.matmul %0, %170, %cst_125 {dimension_numbers = #tpu.dot_dimension_numbers<[1], [0], [0], [1], [0, 0, 1, 1], [], []>} : vector<16x27xbf16>, vector<27x64xbf16>, vector<16x64xf32> -> vector<16x64xf32>
    %c2_126 = arith.constant 2 : index
    %c0_127 = arith.constant 0 : index
    %c0_128 = arith.constant 0 : index
    %172 = vector.load %arg4[%c2_126, %c0_127, %c0_128] : memref<5x16x1xf32, #tpu.memory_space<vmem>>, vector<1x16x1xf32>
    %173 = vector.shape_cast %172 : vector<1x16x1xf32> to vector<16x1xf32>
    %174 = vector.broadcast %173 : vector<16x1xf32> to vector<16x64xf32>
    %175 = arith.mulf %174, %171 : vector<16x64xf32>
    %176 = arith.addf %153, %175 : vector<16x64xf32>
    %c3_129 = arith.constant 3 : index
    %c0_130 = arith.constant 0 : index
    %c0_131 = arith.constant 0 : index
    %177 = vector.load %arg4[%c3_129, %c0_130, %c0_131] : memref<5x16x1xf32, #tpu.memory_space<vmem>>, vector<1x16x1xf32>
    %178 = vector.shape_cast %177 : vector<1x16x1xf32> to vector<16x1xf32>
    %179 = vector.broadcast %178 : vector<16x1xf32> to vector<16x64xf32>
    %180 = arith.mulf %179, %171 : vector<16x64xf32>
    %181 = arith.addf %158, %180 : vector<16x64xf32>
    %c4_132 = arith.constant 4 : index
    %c0_133 = arith.constant 0 : index
    %c0_134 = arith.constant 0 : index
    %182 = vector.load %arg4[%c4_132, %c0_133, %c0_134] : memref<5x16x1xf32, #tpu.memory_space<vmem>>, vector<1x16x1xf32>
    %183 = vector.shape_cast %182 : vector<1x16x1xf32> to vector<16x1xf32>
    %184 = vector.broadcast %183 : vector<16x1xf32> to vector<16x64xf32>
    %185 = arith.mulf %184, %171 : vector<16x64xf32>
    %186 = arith.addf %163, %185 : vector<16x64xf32>
    %cst_135 = arith.constant 0.000000e+00 : f32
    %187 = vector.broadcast %cst_135 : f32 to vector<16x1xf32>
    %cst_136 = arith.constant 0.000000e+00 : f32
    %188 = vector.broadcast %cst_136 : f32 to vector<16x1xf32>
    %c0_137 = arith.constant 0 : index
    %c0_138 = arith.constant 0 : index
    %c0_139 = arith.constant 0 : index
    %c0_140 = arith.constant 0 : index
    %189 = vector.load %arg5[%c0_137, %c0_138, %c0_139, %c0_140] : memref<1x8x16x64xf32, #tpu.memory_space<vmem>>, vector<1x1x16x64xf32>
    %190 = vector.shape_cast %189 : vector<1x1x16x64xf32> to vector<16x64xf32>
    %191 = vector.shape_cast %64 : vector<16x64xf32> to vector<1x1x16x64xf32>
    tpu.vector_store %arg5[%c0_137, %c0_138, %c0_139, %c0_140], %191 {strides = array<i32>} : memref<1x8x16x64xf32, #tpu.memory_space<vmem>>, vector<1x1x16x64xf32>,
    %cst_141 = arith.constant dense<0.000000e+00> : vector<16xf32>
    %192 = vector.multi_reduction <add>, %64, %cst_141 [1] : vector<16x64xf32> to vector<16xf32>
    %193 = vector.shape_cast %192 : vector<16xf32> to vector<16x1xf32>
    %194 = arith.addf %187, %193 : vector<16x1xf32>
    %195 = arith.mulf %64, %64 : vector<16x64xf32>
    %cst_142 = arith.constant dense<0.000000e+00> : vector<16xf32>
    %196 = vector.multi_reduction <add>, %195, %cst_142 [1] : vector<16x64xf32> to vector<16xf32>
    %197 = vector.shape_cast %196 : vector<16xf32> to vector<16x1xf32>
    %198 = arith.addf %188, %197 : vector<16x1xf32>
    %c0_143 = arith.constant 0 : index
    %c1_144 = arith.constant 1 : index
    %c0_145 = arith.constant 0 : index
    %c0_146 = arith.constant 0 : index
    %199 = vector.load %arg5[%c0_143, %c1_144, %c0_145, %c0_146] : memref<1x8x16x64xf32, #tpu.memory_space<vmem>>, vector<1x1x16x64xf32>
    %200 = vector.shape_cast %199 : vector<1x1x16x64xf32> to vector<16x64xf32>
    %201 = vector.shape_cast %91 : vector<16x64xf32> to vector<1x1x16x64xf32>
    tpu.vector_store %arg5[%c0_143, %c1_144, %c0_145, %c0_146], %201 {strides = array<i32>} : memref<1x8x16x64xf32, #tpu.memory_space<vmem>>, vector<1x1x16x64xf32>,
    %cst_147 = arith.constant dense<0.000000e+00> : vector<16xf32>
    %202 = vector.multi_reduction <add>, %91, %cst_147 [1] : vector<16x64xf32> to vector<16xf32>
    %203 = vector.shape_cast %202 : vector<16xf32> to vector<16x1xf32>
    %204 = arith.addf %194, %203 : vector<16x1xf32>
    %205 = arith.mulf %91, %91 : vector<16x64xf32>
    %cst_148 = arith.constant dense<0.000000e+00> : vector<16xf32>
    %206 = vector.multi_reduction <add>, %205, %cst_148 [1] : vector<16x64xf32> to vector<16xf32>
    %207 = vector.shape_cast %206 : vector<16xf32> to vector<16x1xf32>
    %208 = arith.addf %198, %207 : vector<16x1xf32>
    %c0_149 = arith.constant 0 : index
    %c2_150 = arith.constant 2 : index
    %c0_151 = arith.constant 0 : index
    %c0_152 = arith.constant 0 : index
    %209 = vector.load %arg5[%c0_149, %c2_150, %c0_151, %c0_152] : memref<1x8x16x64xf32, #tpu.memory_space<vmem>>, vector<1x1x16x64xf32>
    %210 = vector.shape_cast %209 : vector<1x1x16x64xf32> to vector<16x64xf32>
    %211 = vector.shape_cast %118 : vector<16x64xf32> to vector<1x1x16x64xf32>
    tpu.vector_store %arg5[%c0_149, %c2_150, %c0_151, %c0_152], %211 {strides = array<i32>} : memref<1x8x16x64xf32, #tpu.memory_space<vmem>>, vector<1x1x16x64xf32>,
    %cst_153 = arith.constant dense<0.000000e+00> : vector<16xf32>
    %212 = vector.multi_reduction <add>, %118, %cst_153 [1] : vector<16x64xf32> to vector<16xf32>
    %213 = vector.shape_cast %212 : vector<16xf32> to vector<16x1xf32>
    %214 = arith.addf %204, %213 : vector<16x1xf32>
    %215 = arith.mulf %118, %118 : vector<16x64xf32>
    %cst_154 = arith.constant dense<0.000000e+00> : vector<16xf32>
    %216 = vector.multi_reduction <add>, %215, %cst_154 [1] : vector<16x64xf32> to vector<16xf32>
    %217 = vector.shape_cast %216 : vector<16xf32> to vector<16x1xf32>
    %218 = arith.addf %208, %217 : vector<16x1xf32>
    %c0_155 = arith.constant 0 : index
    %c3_156 = arith.constant 3 : index
    %c0_157 = arith.constant 0 : index
    %c0_158 = arith.constant 0 : index
    %219 = vector.load %arg5[%c0_155, %c3_156, %c0_157, %c0_158] : memref<1x8x16x64xf32, #tpu.memory_space<vmem>>, vector<1x1x16x64xf32>
    %220 = vector.shape_cast %219 : vector<1x1x16x64xf32> to vector<16x64xf32>
    %221 = vector.shape_cast %145 : vector<16x64xf32> to vector<1x1x16x64xf32>
    tpu.vector_store %arg5[%c0_155, %c3_156, %c0_157, %c0_158], %221 {strides = array<i32>} : memref<1x8x16x64xf32, #tpu.memory_space<vmem>>, vector<1x1x16x64xf32>,
    %cst_159 = arith.constant dense<0.000000e+00> : vector<16xf32>
    %222 = vector.multi_reduction <add>, %145, %cst_159 [1] : vector<16x64xf32> to vector<16xf32>
    %223 = vector.shape_cast %222 : vector<16xf32> to vector<16x1xf32>
    %224 = arith.addf %214, %223 : vector<16x1xf32>
    %225 = arith.mulf %145, %145 : vector<16x64xf32>
    %cst_160 = arith.constant dense<0.000000e+00> : vector<16xf32>
    %226 = vector.multi_reduction <add>, %225, %cst_160 [1] : vector<16x64xf32> to vector<16xf32>
    %227 = vector.shape_cast %226 : vector<16xf32> to vector<16x1xf32>
    %228 = arith.addf %218, %227 : vector<16x1xf32>
    %c0_161 = arith.constant 0 : index
    %c4_162 = arith.constant 4 : index
    %c0_163 = arith.constant 0 : index
    %c0_164 = arith.constant 0 : index
    %229 = vector.load %arg5[%c0_161, %c4_162, %c0_163, %c0_164] : memref<1x8x16x64xf32, #tpu.memory_space<vmem>>, vector<1x1x16x64xf32>
    %230 = vector.shape_cast %229 : vector<1x1x16x64xf32> to vector<16x64xf32>
    %231 = vector.shape_cast %168 : vector<16x64xf32> to vector<1x1x16x64xf32>
    tpu.vector_store %arg5[%c0_161, %c4_162, %c0_163, %c0_164], %231 {strides = array<i32>} : memref<1x8x16x64xf32, #tpu.memory_space<vmem>>, vector<1x1x16x64xf32>,
    %cst_165 = arith.constant dense<0.000000e+00> : vector<16xf32>
    %232 = vector.multi_reduction <add>, %168, %cst_165 [1] : vector<16x64xf32> to vector<16xf32>
    %233 = vector.shape_cast %232 : vector<16xf32> to vector<16x1xf32>
    %234 = arith.addf %224, %233 : vector<16x1xf32>
    %235 = arith.mulf %168, %168 : vector<16x64xf32>
    %cst_166 = arith.constant dense<0.000000e+00> : vector<16xf32>
    %236 = vector.multi_reduction <add>, %235, %cst_166 [1] : vector<16x64xf32> to vector<16xf32>
    %237 = vector.shape_cast %236 : vector<16xf32> to vector<16x1xf32>
    %238 = arith.addf %228, %237 : vector<16x1xf32>
    %c0_167 = arith.constant 0 : index
    %c5_168 = arith.constant 5 : index
    %c0_169 = arith.constant 0 : index
    %c0_170 = arith.constant 0 : index
    %239 = vector.load %arg5[%c0_167, %c5_168, %c0_169, %c0_170] : memref<1x8x16x64xf32, #tpu.memory_space<vmem>>, vector<1x1x16x64xf32>
    %240 = vector.shape_cast %239 : vector<1x1x16x64xf32> to vector<16x64xf32>
    %241 = vector.shape_cast %186 : vector<16x64xf32> to vector<1x1x16x64xf32>
    tpu.vector_store %arg5[%c0_167, %c5_168, %c0_169, %c0_170], %241 {strides = array<i32>} : memref<1x8x16x64xf32, #tpu.memory_space<vmem>>, vector<1x1x16x64xf32>,
    %cst_171 = arith.constant dense<0.000000e+00> : vector<16xf32>
    %242 = vector.multi_reduction <add>, %186, %cst_171 [1] : vector<16x64xf32> to vector<16xf32>
    %243 = vector.shape_cast %242 : vector<16xf32> to vector<16x1xf32>
    %244 = arith.addf %234, %243 : vector<16x1xf32>
    %245 = arith.mulf %186, %186 : vector<16x64xf32>
    %cst_172 = arith.constant dense<0.000000e+00> : vector<16xf32>
    %246 = vector.multi_reduction <add>, %245, %cst_172 [1] : vector<16x64xf32> to vector<16xf32>
    %247 = vector.shape_cast %246 : vector<16xf32> to vector<16x1xf32>
    %248 = arith.addf %238, %247 : vector<16x1xf32>
    %c0_173 = arith.constant 0 : index
    %c6_174 = arith.constant 6 : index
    %c0_175 = arith.constant 0 : index
    %c0_176 = arith.constant 0 : index
    %249 = vector.load %arg5[%c0_173, %c6_174, %c0_175, %c0_176] : memref<1x8x16x64xf32, #tpu.memory_space<vmem>>, vector<1x1x16x64xf32>
    %250 = vector.shape_cast %249 : vector<1x1x16x64xf32> to vector<16x64xf32>
    %251 = vector.shape_cast %181 : vector<16x64xf32> to vector<1x1x16x64xf32>
    tpu.vector_store %arg5[%c0_173, %c6_174, %c0_175, %c0_176], %251 {strides = array<i32>} : memref<1x8x16x64xf32, #tpu.memory_space<vmem>>, vector<1x1x16x64xf32>,
    %cst_177 = arith.constant dense<0.000000e+00> : vector<16xf32>
    %252 = vector.multi_reduction <add>, %181, %cst_177 [1] : vector<16x64xf32> to vector<16xf32>
    %253 = vector.shape_cast %252 : vector<16xf32> to vector<16x1xf32>
    %254 = arith.addf %244, %253 : vector<16x1xf32>
    %255 = arith.mulf %181, %181 : vector<16x64xf32>
    %cst_178 = arith.constant dense<0.000000e+00> : vector<16xf32>
    %256 = vector.multi_reduction <add>, %255, %cst_178 [1] : vector<16x64xf32> to vector<16xf32>
    %257 = vector.shape_cast %256 : vector<16xf32> to vector<16x1xf32>
    %258 = arith.addf %248, %257 : vector<16x1xf32>
    %c0_179 = arith.constant 0 : index
    %c7_180 = arith.constant 7 : index
    %c0_181 = arith.constant 0 : index
    %c0_182 = arith.constant 0 : index
    %259 = vector.load %arg5[%c0_179, %c7_180, %c0_181, %c0_182] : memref<1x8x16x64xf32, #tpu.memory_space<vmem>>, vector<1x1x16x64xf32>
    %260 = vector.shape_cast %259 : vector<1x1x16x64xf32> to vector<16x64xf32>
    %261 = vector.shape_cast %176 : vector<16x64xf32> to vector<1x1x16x64xf32>
    tpu.vector_store %arg5[%c0_179, %c7_180, %c0_181, %c0_182], %261 {strides = array<i32>} : memref<1x8x16x64xf32, #tpu.memory_space<vmem>>, vector<1x1x16x64xf32>,
    %cst_183 = arith.constant dense<0.000000e+00> : vector<16xf32>
    %262 = vector.multi_reduction <add>, %176, %cst_183 [1] : vector<16x64xf32> to vector<16xf32>
    %263 = vector.shape_cast %262 : vector<16xf32> to vector<16x1xf32>
    %264 = arith.addf %254, %263 : vector<16x1xf32>
    %265 = arith.mulf %176, %176 : vector<16x64xf32>
    %cst_184 = arith.constant dense<0.000000e+00> : vector<16xf32>
    %266 = vector.multi_reduction <add>, %265, %cst_184 [1] : vector<16x64xf32> to vector<16xf32>
    %267 = vector.shape_cast %266 : vector<16xf32> to vector<16x1xf32>
    %268 = arith.addf %258, %267 : vector<16x1xf32>
    %c0_185 = arith.constant 0 : index
    %c0_186 = arith.constant 0 : index
    %c0_187 = arith.constant 0 : index
    %c0_188 = arith.constant 0 : index
    %269 = vector.load %arg6[%c0_185, %c0_186, %c0_187, %c0_188] : memref<1x1x16x1xf32, #tpu.memory_space<vmem>>, vector<1x1x16x1xf32>
    %270 = vector.shape_cast %269 : vector<1x1x16x1xf32> to vector<16x1xf32>
    %271 = vector.shape_cast %264 : vector<16x1xf32> to vector<1x1x16x1xf32>
    tpu.vector_store %arg6[%c0_185, %c0_186, %c0_187, %c0_188], %271 {strides = array<i32>} : memref<1x1x16x1xf32, #tpu.memory_space<vmem>>, vector<1x1x16x1xf32>,
    %c0_189 = arith.constant 0 : index
    %c0_190 = arith.constant 0 : index
    %c0_191 = arith.constant 0 : index
    %c0_192 = arith.constant 0 : index
    %272 = vector.load %arg7[%c0_189, %c0_190, %c0_191, %c0_192] : memref<1x1x16x1xf32, #tpu.memory_space<vmem>>, vector<1x1x16x1xf32>
    %273 = vector.shape_cast %272 : vector<1x1x16x1xf32> to vector<16x1xf32>
    %274 = vector.shape_cast %268 : vector<16x1xf32> to vector<1x1x16x1xf32>
    tpu.vector_store %arg7[%c0_189, %c0_190, %c0_191, %c0_192], %274 {strides = array<i32>} : memref<1x1x16x1xf32, #tpu.memory_space<vmem>>, vector<1x1x16x1xf32>,
    return
  }
  func.func @transform_0(%arg0: i32, %arg1: i32) -> (i32, i32, i32, i32) {
    %c0_i32 = arith.constant 0 : i32
    %c0_i32_0 = arith.constant 0 : i32
    %c0_i32_1 = arith.constant 0 : i32
    return %arg0, %c0_i32, %c0_i32_0, %arg1 : i32, i32, i32, i32
  }
  func.func @transform_1(%arg0: i32, %arg1: i32) -> (i32, i32) {
    %c0_i32 = arith.constant 0 : i32
    %c0_i32_0 = arith.constant 0 : i32
    %c0_i32_1 = arith.constant 0 : i32
    return %c0_i32, %c0_i32_0 : i32, i32
  }
  func.func @transform_2(%arg0: i32, %arg1: i32) -> (i32, i32, i32) {
    %c0_i32 = arith.constant 0 : i32
    %c0_i32_0 = arith.constant 0 : i32
    %c0_i32_1 = arith.constant 0 : i32
    %c0_i32_2 = arith.constant 0 : i32
    return %c0_i32, %c0_i32_0, %c0_i32_1 : i32, i32, i32
  }
  func.func @transform_3(%arg0: i32, %arg1: i32) -> (i32, i32, i32, i32) {
    %c0_i32 = arith.constant 0 : i32
    %c0_i32_0 = arith.constant 0 : i32
    %c0_i32_1 = arith.constant 0 : i32
    return %arg0, %c0_i32, %c0_i32_0, %arg1 : i32, i32, i32, i32
  }
  func.func @transform_4(%arg0: i32, %arg1: i32) -> (i32, i32, i32, i32) {
    %c0_i32 = arith.constant 0 : i32
    %c0_i32_0 = arith.constant 0 : i32
    %c0_i32_1 = arith.constant 0 : i32
    return %arg0, %arg1, %c0_i32, %c0_i32_0 : i32, i32, i32, i32
  }
  func.func @transform_5(%arg0: i32, %arg1: i32) -> (i32, i32, i32, i32) {
    %c0_i32 = arith.constant 0 : i32
    %c0_i32_0 = arith.constant 0 : i32
    %c0_i32_1 = arith.constant 0 : i32
    return %arg0, %arg1, %c0_i32, %c0_i32_0 : i32, i32, i32, i32
  }
}

</mosaic_0001>

<bundles_post_ra>
// kernel: tpu_custom_call.1
= control target key start
LH: loop header
LB: loop body
LE: loop exit
PB: predicated region body
PF: predicated region fallthrough
CT: control target
= control target key end

     0   :  { %11 = vsyncpa [#allocation3], 0  ;;  %s2172_s0 = inlined_call_operand.vmem [shape: bf16[2,8,27,64], index: 0, kind: input, shape index: {}]   ;;  %s2173_s1 = inlined_call_operand.vmem [shape: bf16[16,27], index: 1, kind: input, shape index: {}]   ;;  %s2174_s2 = inlined_call_operand.vmem [shape: f32[5,16,1], index: 2, kind: input, shape index: {}]   ;;  %s2175_s3 = inlined_call_operand.hbm [shape: f32[2,8,16,64], index: 3, kind: output, shape index: {0}]   ;;  %s2176_s4 = inlined_call_operand.vmem [shape: f32[2,1,16,1], index: 4, kind: output, shape index: {1}]   ;;  %s2177_s5 = inlined_call_operand.vmem [shape: f32[2,1,16,1], index: 5, kind: output, shape index: {2}]  }
   0x1   :  { %13 = vsyncpa [#allocation3 + $0x1], 0  ;;  %s1723_s18 = smov 0   ;;  %s1725_s19 = smov 0  }
   0x2   :  { %s1727_s20 = smov 0   ;;  %s1729_s21 = smov 0  }
   0x3   :  { %s1731_s22 = smov 0   ;;  %s1733_s23 = smov 0  }
   0x4 LB: > { %s1344_s24 = sadd.s32 4294967295, %s1684_s23   ;;  %s1345_s25 = sadd.s32 4294967294, %s1684_s23   ;;  %s1684_s23 = sphi %s1733_s23, %s19_s23   ;;  %s1680_s22 = sphi %s1731_s22, %s2184_s22   ;;  %s1676_s21 = sphi %s1729_s21, %s2183_s21   ;;  %s1672_s20 = sphi %s1727_s20, %s2182_s20   ;;  %s1668_s19 = sphi %s1725_s19, %s2181_s19   ;;  %s1664_s18 = sphi %s1723_s18, %s2180_s18  }
   0x5   : > { %s31_s26 = sadd.s32 1, %s1680_s22  ;;  %s110_s27 = sadd.s32 1, %s1672_s20 }
   0x6   : > { %p33_p0 = scmp.ge.s32.totalorder %s31_s26, 2  ;;  %p120_p1 = scmp.ne.s32.totalorder %s1672_s20, %s1668_s19 }
   0x7   : > { %p121_p2 = scmp.eq.s32.totalorder %s1344_s24, 1  ;;  %p126_p3 = scmp.ne.s32.totalorder %s1668_s19, %s1664_s18 }
   0x8   : > { %s2186_s26 = smov (%p33_p0, %s31_s26), 0  ;;  %p127_p5 = scmp.eq.s32.totalorder %s1345_s25, 1 }
   0x9   : > { %p1763_p4 = por %p121_p2, %p120_p1  ;;  %s105_s29 = ssub.s32 %s1680_s22, %s2186_s26 }
   0xa   : > { %p1348_p6 = scmp.ge.s32.totalorder %s1684_s23, 1  ;;  %p108_p7 = scmp.eq.s32.totalorder %s105_s29, 0 }
   0xb   : > { %p1770_p8 = por %p127_p5, %p126_p3  ;;  %p218_p9 = scmp.lt.s32.totalorder %s1684_s23, 3 }
   0xc   : > { %s1776_s6 = scalar_select %p108_p7, %s1672_s20, %s110_s27  }
   0xd   : > { %p219_p10 = pnand %p1348_p6, %p218_p9 }
   0xe   : > { %p267_p11 = scmp.lt.s32.totalorder (!%p219_p10), %s1676_s21, 1  ;;  %s1439_s9 = sshll.u32 (!%p219_p10), %s1676_s21, 11 }
   0xf   : > { %222 = sbr.rel (%p219_p10) target bundleno = 446 (0x1be), region = 32  ;;  %s2110_s13 = scalar_lea.hbm (!%p219_p10), %s2175_s3, %s1439_s9 }
  0x14   : > { %vm320_vm0 = vcmask 1044480   ;;  %v1686_v0 = vmov 0.0   ;;  %s1782_s7 = scalar_select %p267_p11, %s1676_s21, 1  ;;  %vm321_vm1 = vcmask 1045504   ;;  %v1687_v1 = vmov 65535   ;;  %v368_v3 = vld [vmem:[%s2174_s2] sm:$0xff] }
  0x15   : > { %1464 = vmatprep.subr.bf16.mxu0 %v1686_v0  ;;  %1472 = vmatprep.subr.bf16.mxu1 %v1686_v0  ;;  %v322_v2 = vsel %vm320_vm0, 4294967295, %v1687_v1  ;;  %vm1688_vm2 = vmmov 0   ;;  %v1689_v4 = vmov 0   ;;  %v1360_v5 = vld [vmem:[%s2174_s2 + $0x10] sm:$0xff]  ;;  %v369_v7 = vld [vmem:[%s2174_s2 + $0x8] sm:$0xff]  ;;  %v1361_v8 = vld [vmem:[%s2174_s2 + $0x18] sm:$0xff] }
  0x16   : > { %1468 = vmatprep.mubr.msk.bf16.mxu0 %vm1688_vm2, %v1686_v0  ;;  %1476 = vmatprep.mubr.msk.bf16.mxu1 %vm1688_vm2, %v1686_v0  ;;  %s1436_s12 = sshll.u32 %s1782_s7, 7  ;;  %v1800_v6 = vsel %vm321_vm1, %v322_v2, 0  ;;  %v1362_v11 = vld [vmem:[%s2174_s2 + $0x20] sm:$0xff]  ;;  %v1363_v14 = vld [vmem:[%s2174_s2 + $0x28] sm:$0xff]  ;;  %v1371_v20 = vld [vmem:[%s2174_s2 + $0x30] sm:$0xff]  ;;  %vm316_vm3 = vcmask 220160  }
  0x17   : > { %1589 = vset.pattern.permute.xlu0 %v1689_v4  ;;  %1590 = vset.pattern.permute.xlu1 %v1689_v4  ;;  %s1798_s15 = scalar_lea.vmem %s2172_s0, %s1436_s12  ;;  %v1827_v19 = vld [vmem:[%s2173_s1] sm:$0xff]   ;;  %v1372_v22 = vld [vmem:[%s2174_s2 + $0x38] sm:$0xff]  ;;  %v1381_v27 = vld [vmem:[%s2174_s2 + $0x48] sm:$0xff]  ;;  %vm972_vm4 = vcmask 523264   ;;  %s1690_s21 = smov [#allocation2]  }
  0x18   : > { %372 = vperm.xlu0 %1589, %v368_v3   ;;  %387 = vperm.xlu1 %1590, %v1360_v5   ;;  %v1591_v9 = vld [vmem:[%s1798_s15 + $0x8] sm:$0x3f]   ;;  %v1592_v10 = vld [vmem:[%s1798_s15 + $0x18] sm:$0x3f]   ;;  %v1593_v13 = vld [vmem:[%s1798_s15] sm:$0xff]   ;;  %s1612_s17 = sshll.u32 %s1690_s21, 4  ;;  %s1613_s17 = int_to_ptr.vmem [resolvable:$false] %s1612_s17 }
  0x19   : > { %v325_v12 = vand.u32 %v1591_v9, %v1800_v6  ;;  %v429_v15 = vand.u32 %v1592_v10, %v1800_v6  ;;  %v1594_v16 = vld [vmem:[%s1798_s15 + $0x10] sm:$0xff]   ;;  %v1596_v17 = vld [vmem:[%s1798_s15 + $0x28] sm:$0x3f]   ;;  %v1597_v18 = vld [vmem:[%s1798_s15 + $0x38] sm:$0x3f]   ;;  %s1614_s24 = scalar_lea.vmem %s1613_s17, 4096 }
  0x1a   : > { %v516_v21 = vand.u32 %v1596_v17, %v1800_v6  ;;  %v607_v23 = vand.u32 %v1597_v18, %v1800_v6  ;;  %v1598_v24 = vld [vmem:[%s1798_s15 + $0x20] sm:$0xff]   ;;  %v1599_v26 = vld [vmem:[%s1798_s15 + $0x30] sm:$0xff]   ;;  %v1600_v28 = vld [vmem:[%s1798_s15 + $0x48] sm:$0x3f]  }
  0x1b   : > { %1465 = vmatpush3.bf16.msra.mxu0 %v325_v12  ;;  %1473 = vmatpush3.bf16.msra.mxu1 %v429_v15  ;;  %v1380_v25 = vld [vmem:[%s2174_s2 + $0x40] sm:$0xff]  ;;  %v1601_v29 = vld [vmem:[%s1798_s15 + $0x58] sm:$0x3f]   ;;  %v685_v30 = vand.u32 %v1600_v28, %v1800_v6  ;;  %v1604_v33 = vld [vmem:[%s1798_s15 + $0x68] sm:$0x3f]  }
  0x1c   : > { %377 = vperm.xlu0 %1589, %v369_v7   ;;  %392 = vperm.xlu1 %1590, %v1361_v8   ;;  %v763_v31 = vand.u32 %v1601_v29, %v1800_v6  ;;  %v1602_v32 = vld [vmem:[%s1798_s15 + $0x40] sm:$0xff]   ;;  %v1603_v34 = vld [vmem:[%s1798_s15 + $0x50] sm:$0xff]   ;;  %v1605_v35 = vld [vmem:[%s1798_s15 + $0x78] sm:$0x3f]   ;;  %v841_v36 = vand.u32 %v1604_v33, %v1800_v6 }
  0x1d   : > { %1466 = vmatprep.subr.bf16.mxu0 %v1686_v0  ;;  %1474 = vmatprep.subr.bf16.mxu1 %v1686_v0  ;;  %v917_v37 = vand.u32 %v1605_v35, %v1800_v6  ;;  %v1606_v38 = vld [vmem:[%s1798_s15 + $0x60] sm:$0xff]   ;;  %v1607_v39 = vld [vmem:[%s1798_s15 + $0x70] sm:$0xff]   ;;  %s242_s15 = sand.u32 1, %s1668_s19  }
  0x1e   : > { %s1933_s29 = sshll.u32 %s242_s15, 7  ;;  %s2116_s14 = scalar_lea.sflag [#allocation3], %s242_s15 }
  0x1f   : > { %1467 = vmatpush3.bf16.msra.mxu0 %v1593_v13  ;;  %1475 = vmatpush3.bf16.msra.mxu1 %v1594_v16  ;;  %s1957_s8 = scalar_lea.vmem [#allocation2], %s1933_s29 }
  0x20   : > { %402 = vperm.xlu0 %1589, %v1362_v11   ;;  %407 = vperm.xlu1 %1590, %v1363_v14   ;;  %s1178_s10 = sshll.u32 %s1957_s8, 4  ;;  %s2112_s10 = int_to_ptr.vmem [resolvable:$true] %s1178_s10 }
  0x21   : > { %1480 = vmatprep.subr.bf16.mxu0 %v1686_v0  ;;  %1488 = vmatprep.subr.bf16.mxu1 %v1686_v0  ;;  %s1608_s16 = scalar_lea.vmem %s2112_s10, 2048  ;;  %p1615_p1 = scmp.lt.s32.totalorder %s2112_s10, %s1613_s17 }
  0x22   : > { %1469 = vmatmul.mubr.msk.bf16.vlgmr.msra.gmra.mxu0 %vm316_vm3, %v1827_v19  ;;  %1477 = vmatmul.mubr.msk.bf16.vlgmr.msra.gmra.mxu1 %vm316_vm3, %v1827_v19  ;;  %p1609_p12 = scmp.ne.s32.totalorder %s2112_s10, %s1608_s16  ;;  %p1616_p2 = scmp.lt.s32.totalorder %s1614_s24, %s1608_s16 }
  0x23   : > { %1481 = vmatpush3.bf16.msra.mxu0 %v516_v21  ;;  %1489 = vmatpush3.bf16.msra.mxu1 %v607_v23 }
  0x24   : > { %487 = vperm.xlu0 %1589, %v1371_v20   ;;  %492 = vperm.xlu1 %1590, %v1372_v22   ;;  %p1610_p13 = pnand %p1609_p12, %p1763_p4  ;;  %p1617_p3 = por %p1616_p2, %p1615_p1 }
  0x25   : > { %1482 = vmatprep.subr.bf16.mxu0 %v1686_v0  ;;  %1490 = vmatprep.subr.bf16.mxu1 %v1686_v0 }
  0x26   : > { %1484 = vmatprep.mubr.msk.bf16.mxu0 %vm1688_vm2, %v1686_v0  ;;  %1492 = vmatprep.mubr.msk.bf16.mxu1 %vm1688_vm2, %v1686_v0  ;;  %p1611_p0 = pneg %p1610_p13 }
  0x27   : > { %1483 = vmatpush3.bf16.msra.mxu0 %v1598_v24  ;;  %1491 = vmatpush3.bf16.msra.mxu1 %v1599_v26 }
  0x28   : > { %578 = vperm.xlu0 %1589, %v1380_v25   ;;  %583 = vperm.xlu1 %1590, %v1381_v27   ;;  %p1618_p5 = pnand %p1617_p3, %p1611_p0 }
  0x29   : > { %1496 = vmatprep.subr.bf16.mxu0 %v1686_v0  ;;  %1504 = vmatprep.subr.bf16.mxu1 %v1686_v0 }
  0x2a   : > { %1485 = vmatmul.mubr.msk.bf16.vlgmr.msra.gmra.mxu0 %vm316_vm3, %v1827_v19  ;;  %1493 = vmatmul.mubr.msk.bf16.vlgmr.msra.gmra.mxu1 %vm316_vm3, %v1827_v19 }
  0x2b   : > { %1497 = vmatpush3.bf16.msra.mxu0 %v685_v30  ;;  %1505 = vmatpush3.bf16.msra.mxu1 %v763_v31 }
  0x2c   : > { %1498 = vmatprep.subr.bf16.mxu0 %v1686_v0  ;;  %1506 = vmatprep.subr.bf16.mxu1 %v1686_v0 }
  0x2d   : > { %1500 = vmatprep.mubr.msk.bf16.mxu0 %vm1688_vm2, %v1686_v0  ;;  %1508 = vmatprep.mubr.msk.bf16.mxu1 %vm1688_vm2, %v1686_v0 }
  0x2f   : > { %1499 = vmatpush3.bf16.msra.mxu0 %v1602_v32  ;;  %1507 = vmatpush3.bf16.msra.mxu1 %v1603_v34 }
  0x30   : > { %1512 = vmatprep.subr.bf16.mxu0 %v1686_v0  ;;  %1520 = vmatprep.subr.bf16.mxu1 %v1686_v0 }
  0x32   : > { %1501 = vmatmul.mubr.msk.bf16.vlgmr.msra.gmra.mxu0 %vm316_vm3, %v1827_v19  ;;  %1509 = vmatmul.mubr.msk.bf16.vlgmr.msra.gmra.mxu1 %vm316_vm3, %v1827_v19 }
  0x33   : > { %1513 = vmatpush3.bf16.msra.mxu0 %v841_v36  ;;  %1521 = vmatpush3.bf16.msra.mxu1 %v917_v37 }
  0x34   : > { %1514 = vmatprep.subr.bf16.mxu0 %v1686_v0  ;;  %1522 = vmatprep.subr.bf16.mxu1 %v1686_v0 }
  0x35   : > { %1516 = vmatprep.mubr.msk.bf16.mxu0 %vm1688_vm2, %v1686_v0  ;;  %1524 = vmatprep.mubr.msk.bf16.mxu1 %vm1688_vm2, %v1686_v0 }
  0x37   : > { %1515 = vmatpush3.bf16.msra.mxu0 %v1606_v38  ;;  %1523 = vmatpush3.bf16.msra.mxu1 %v1607_v39 }
  0x3a   : > { %1517 = vmatmul.mubr.msk.bf16.vlgmr.msra.gmra.mxu0 %vm316_vm3, %v1827_v19  ;;  %1525 = vmatmul.mubr.msk.bf16.vlgmr.msra.gmra.mxu1 %vm316_vm3, %v1827_v19 }
  0x93   : > { %v1897_v40 = vpop.permute.xlu0 %372  ;;  %v1899_v41 = vpop.permute.xlu1 %387 }
  0x97   : > { %v1901_v42 = vpop.permute.xlu0 %377  ;;  %v1903_v43 = vpop.permute.xlu1 %392 }
  0x9b   : > { %v1905_v44 = vpop.permute.xlu0 %402  ;;  %v1907_v47 = vpop.permute.xlu1 %407 }
  0x9f   : > { %v1909_v50 = vpop.permute.xlu0 %487  ;;  %v1917_v61 = vpop.permute.xlu1 %492 }
  0xa3   : > { %v1927_v8 = vpop.permute.xlu0 %578  ;;  %v1944_v29 = vpop.permute.xlu1 %583 }
  0xe2   : > { %v361_v45 = vpop.f32.mrf.mxu0  ;;  %v465_v46 = vpop.f32.mrf.mxu1 }
  0xe3   : > { %v395_v51 = vmul.f32 %v1899_v41, %v361_v45  ;;  %v478_v52 = vmul.f32 %v465_v46, %v1905_v44  ;;  %v380_v56 = vmul.f32 %v1897_v40, %v361_v45  ;;  %v410_v57 = vmul.f32 %v1905_v44, %v361_v45 }
  0xe4   : > { %v1470_v48 = vpop.f32.mrf.mxu0  ;;  %v1478_v49 = vpop.f32.mrf.mxu1  ;;  %v474_v58 = vmul.f32 %v465_v46, %v1899_v41  ;;  %v495_v59 = vmul.f32 %v1909_v50, %v465_v46  ;;  %v472_v10 = vmul.f32 %v465_v46, %v1897_v40 }
  0xe5   : > { %v480_v62 = vadd.f32 %v478_v52, %v395_v51 }
  0xe6   : > { %v364_v53 = vpop.f32.mrf.mxu0  ;;  %v468_v54 = vpop.f32.mrf.mxu1  ;;  %v476_v14 = vadd.f32 %v474_v58, %v380_v56  ;;  %v497_v18 = vadd.f32 %v495_v59, %v410_v57 }
  0xe7   : > { %v381_v63 = vmul.f32 %v1901_v42, %v364_v53  ;;  %v396_v0 = vmul.f32 %v1903_v43, %v364_v53  ;;  %v475_v1 = vmul.f32 %v468_v54, %v1903_v43  ;;  %v411_v3 = vmul.f32 %v1907_v47, %v364_v53 }
  0xe8   : > { %v1471_v55 = vpop.f32.mrf.mxu0  ;;  %v1479_v60 = vpop.f32.mrf.mxu1  ;;  %v479_v4 = vmul.f32 %v468_v54, %v1907_v47  ;;  %v496_v5 = vmul.f32 %v1917_v61, %v468_v54  ;;  %v473_v15 = vmul.f32 %v468_v54, %v1901_v42 }
  0xe9   : > { %v1936_v16 = vadd.f32 %v475_v1, %v381_v63 }
  0xea   : > { %v552_v2 = vpop.f32.mrf.mxu0  ;;  %v643_v7 = vpop.f32.mrf.mxu1  ;;  %v481_v19 = vadd.f32 %v479_v4, %v396_v0  ;;  %v498_v23 = vadd.f32 %v496_v5, %v411_v3 }
  0xeb   : > { %v569_v6 = vmul.f32 %v552_v2, %v1909_v50  ;;  %v586_v12 = vmul.f32 %v1927_v8, %v552_v2  ;;  %v664_v22 = vmul.f32 %v643_v7, %v1927_v8  ;;  %v559_v24 = vmul.f32 %v552_v2, %v1897_v40 }
  0xec   : > { %v1486_v9 = vpop.f32.mrf.mxu0  ;;  %v1494_v11 = vpop.f32.mrf.mxu1  ;;  %v561_v25 = vmul.f32 %v552_v2, %v1899_v41  ;;  %v565_v26 = vmul.f32 %v552_v2, %v1905_v44  ;;  %v652_v27 = vmul.f32 %v643_v7, %v1899_v41  ;;  %v650_v30 = vmul.f32 %v643_v7, %v1897_v40 }
  0xed   : > { %v571_v13 = vadd.f32 %v569_v6, %v480_v62  ;;  %v1948_v31 = vmul.f32 %v643_v7, %v1905_v44  ;;  %v588_v33 = vadd.f32 %v586_v12, %v497_v18  ;;  %v660_v35 = vmul.f32 %v643_v7, %v1909_v50 }
  0xee   : > { %v555_v17 = vpop.f32.mrf.mxu0  ;;  %v646_v21 = vpop.f32.mrf.mxu1  ;;  %v1966_v52 = vadd.f32 %v561_v25, %v472_v10  ;;  %v1968_v53 = vadd.f32 %v652_v27, %v559_v24  ;;  %v567_v56 = vadd.f32 %v565_v26, %v476_v14 }
  0xef   : > { %v570_v20 = vmul.f32 %v555_v17, %v1917_v61  ;;  %v666_v34 = vadd.f32 %v664_v22, %v571_v13  ;;  %v560_v36 = vmul.f32 %v555_v17, %v1901_v42  ;;  %v587_v38 = vmul.f32 %v1944_v29, %v555_v17  ;;  %973 = vst.msk [vmem:[%s1957_s8] sm:$0xff] %vm972_vm4, %v588_v33 }
  0xf0   : > { %v1487_v28 = vpop.f32.mrf.mxu0  ;;  %v1495_v32 = vpop.f32.mrf.mxu1  ;;  %v562_v45 = vmul.f32 %v555_v17, %v1903_v43  ;;  %v653_v46 = vmul.f32 %v646_v21, %v1903_v43  ;;  %v975_v48 = vsel %vm972_vm4, %v588_v33, 0.0  ;;  %v665_v55 = vmul.f32 %v646_v21, %v1944_v29 }
  0xf1   : > { %v572_v39 = vadd.f32 %v570_v20, %v481_v19  ;;  %v996_v51 = vsel %vm972_vm4, %v666_v34, 0.0  ;;  %1417 = vst.msk [vmem:[%s1957_s8 + $0x10] sm:$0xff] %vm972_vm4, %v666_v34  ;;  %976 = vadd.xlane.f32.xlu0 %v975_v48  ;;  %v566_v57 = vmul.f32 %v555_v17, %v1907_v47  ;;  %v651_v58 = vmul.f32 %v646_v21, %v1901_v42 }
  0xf2   : > { %v721_v37 = vpop.f32.mrf.mxu0  ;;  %v1961_v49 = vpop.f32.mrf.mxu1  ;;  %v657_v59 = vmul.f32 %v646_v21, %v1907_v47  ;;  %997 = vadd.xlane.f32.xlu1 %v996_v51  ;;  %v983_v62 = vmul.f32 %v588_v33, %v588_v33  ;;  %v589_v0 = vadd.f32 %v587_v38, %v498_v23  ;;  %v564_v4 = vadd.f32 %v562_v45, %v473_v15 }
  0xf3   : > { %v730_v63 = vmul.f32 %v721_v37, %v1899_v41  ;;  %v667_v2 = vadd.f32 %v665_v55, %v572_v39  ;;  %v742_v3 = vmul.f32 %v721_v37, %v1927_v8  ;;  %v1976_v5 = vadd.f32 %v653_v46, %v560_v36 }
  0xf4   : > { %v1502_v54 = vpop.f32.mrf.mxu0  ;;  %v1510_v60 = vpop.f32.mrf.mxu1  ;;  %v661_v6 = vmul.f32 %v646_v21, %v1917_v61  ;;  %v985_v7 = vsel %vm972_vm4, %v983_v62, 0.0  ;;  %v808_v10 = vmul.f32 %v1961_v49, %v1899_v41  ;;  %v728_v11 = vmul.f32 %v721_v37, %v1897_v40  ;;  %974 = vst.msk [vmem:[%s1957_s8 + $0x8] sm:$0xff] %vm972_vm4, %v589_v0 }
  0xf5   : > { %986 = vadd.xlane.f32.xlu0 %v985_v7  ;;  %1418 = vst.msk [vmem:[%s1957_s8 + $0x18] sm:$0xff] %vm972_vm4, %v667_v2  ;;  %v662_v14 = vadd.f32 %v660_v35, %v567_v56  ;;  %v812_v15 = vmul.f32 %v1961_v49, %v1905_v44  ;;  %v978_v17 = vsel %vm972_vm4, %v589_v0, 0.0  ;;  %v984_v19 = vmul.f32 %v589_v0, %v589_v0 }
  0xf6   : > { %v724_v1 = vpop.f32.mrf.mxu0  ;;  %v1980_v9 = vpop.f32.mrf.mxu1  ;;  %v1004_v20 = vmul.f32 %v666_v34, %v666_v34  ;;  %v816_v21 = vmul.f32 %v1961_v49, %v1909_v50  ;;  %v732_v22 = vadd.f32 %v730_v63, %v650_v30  ;;  %v734_v23 = vmul.f32 %v721_v37, %v1905_v44  ;;  %979 = vadd.xlane.f32.xlu1 %v978_v17 }
  0xf7   : > { %v731_v12 = vmul.f32 %v724_v1, %v1903_v43  ;;  %v744_v25 = vadd.f32 %v742_v3, %v662_v14  ;;  %v738_v26 = vmul.f32 %v721_v37, %v1909_v50  ;;  %v1998_v27 = vmul.f32 %v724_v1, %v1901_v42 }
  0xf8   : > { %v1503_v13 = vpop.f32.mrf.mxu0  ;;  %v1511_v18 = vpop.f32.mrf.mxu1  ;;  %v735_v28 = vmul.f32 %v724_v1, %v1907_v47  ;;  %v988_v32 = vsel %vm972_vm4, %v984_v19, 0.0  ;;  %v2006_v30 = vmul.f32 %v1980_v9, %v1903_v43  ;;  %v813_v34 = vmul.f32 %v1980_v9, %v1907_v47 }
  0xf9   : > { %v817_v35 = vmul.f32 %v1980_v9, %v1917_v61  ;;  %v733_v36 = vadd.f32 %v731_v12, %v651_v58  ;;  %989 = vadd.xlane.f32.xlu0 %v988_v32  ;;  %1419 = vst.msk [vmem:[%s1957_s8 + $0x20] sm:$0xff] %vm972_vm4, %v744_v25  ;;  %v739_v38 = vmul.f32 %v724_v1, %v1917_v61  ;;  %v1006_v39 = vsel %vm972_vm4, %v1004_v20, 0.0 }
  0xfa   : > { %v877_v24 = vpop.f32.mrf.mxu0  ;;  %v2002_v33 = vpop.f32.mrf.mxu1  ;;  %v999_v46 = vsel %vm972_vm4, %v667_v2, 0.0  ;;  %v568_v48 = vadd.f32 %v566_v57, %v1936_v16  ;;  %1007 = vadd.xlane.f32.xlu1 %v1006_v39  ;;  %v1005_v58 = vmul.f32 %v667_v2, %v667_v2  ;;  %v743_v63 = vmul.f32 %v724_v1, %v1944_v29 }
  0xfb   : > { %v2019_v51 = vmul.f32 %v877_v24, %v1899_v41  ;;  %v888_v54 = vmul.f32 %v877_v24, %v1905_v44  ;;  %v892_v55 = vmul.f32 %v877_v24, %v1909_v50  ;;  %v896_v60 = vmul.f32 %v877_v24, %v1927_v8 }
  0xfc   : > { %v1518_v37 = vpop.f32.mrf.mxu0  ;;  %v1526_v45 = vpop.f32.mrf.mxu1  ;;  %v658_v0 = vadd.f32 %v1948_v31, %v1966_v52  ;;  %v659_v16 = vadd.f32 %v657_v59, %v564_v4  ;;  %v1017_v41 = vsel %vm972_vm4, %v744_v25, 0.0  ;;  %v1025_v3 = vmul.f32 %v744_v25, %v744_v25 }
  0xfd   : > { %1000 = vadd.xlane.f32.xlu0 %v999_v46  ;;  %v820_v7 = vmul.f32 %v1961_v49, %v1927_v8  ;;  %v663_v12 = vadd.f32 %v661_v6, %v568_v48  ;;  %v821_v1 = vmul.f32 %v1980_v9, %v1944_v29  ;;  %v736_v31 = vadd.f32 %v734_v23, %v1968_v53 }
  0xfe   : > { %v880_v56 = vpop.f32.mrf.mxu0  ;;  %v2024_v62 = vpop.f32.mrf.mxu1  ;;  %v740_v13 = vadd.f32 %v738_v26, %v658_v0  ;;  %v741_v14 = vadd.f32 %v739_v38, %v659_v16  ;;  %1018 = vadd.xlane.f32.xlu1 %v1017_v41  ;;  %v737_v52 = vadd.f32 %v735_v28, %v1976_v5  ;;  %v814_v59 = vadd.f32 %v812_v15, %v732_v22 }
  0xff   : > { %v897_v57 = vmul.f32 %v880_v56, %v1944_v29  ;;  %v810_v4 = vadd.f32 %v808_v10, %v728_v11  ;;  %v1009_v18 = vsel %vm972_vm4, %v1005_v58, 0.0  ;;  %v745_v19 = vadd.f32 %v743_v63, %v663_v12 }
 0x100   : > { %v1519_v2 = vpop.f32.mrf.mxu0  ;;  %v1527_v17 = vpop.f32.mrf.mxu1  ;;  %v822_v6 = vadd.f32 %v820_v7, %v740_v13  ;;  %v823_v20 = vadd.f32 %v821_v1, %v741_v14  ;;  %v818_v24 = vadd.f32 %v816_v21, %v736_v31  ;;  %v819_v25 = vadd.f32 %v817_v35, %v737_v52 }
 0x101   : > { %1010 = vadd.xlane.f32.xlu0 %v1009_v18  ;;  %v894_v26 = vadd.f32 %v892_v55, %v814_v59  ;;  %v890_v32 = vadd.f32 %v888_v54, %v810_v4  ;;  %v964_v53 = vmul.f32 %v2002_v33, %v1909_v50  ;;  %v968_v5 = vmul.f32 %v2002_v33, %v1927_v8 }
 0x102   : > { %v893_v15 = vmul.f32 %v880_v56, %v1917_v61  ;;  %v1027_v10 = vsel %vm972_vm4, %v1025_v3, 0.0  ;;  %1420 = vst.msk [vmem:[%s1957_s8 + $0x28] sm:$0xff] %vm972_vm4, %v745_v19  ;;  %1421 = vst.msk [vmem:[%s1957_s8 + $0x30] sm:$0xff] %vm972_vm4, %v822_v6  ;;  %v885_v11 = vmul.f32 %v880_v56, %v1903_v43  ;;  %v898_v21 = vadd.f32 %v896_v60, %v818_v24 }
 0x103   : > { %1422 = vst.msk [vmem:[%s1957_s8 + $0x38] sm:$0xff] %vm972_vm4, %v823_v20  ;;  %1028 = vadd.xlane.f32.xlu1 %v1027_v10  ;;  %v899_v50 = vadd.f32 %v897_v57, %v819_v25  ;;  %v815_v8 = vadd.f32 %v813_v34, %v733_v36  ;;  %v1020_v22 = vsel %vm972_vm4, %v745_v19, 0.0  ;;  %v1026_v23 = vmul.f32 %v745_v19, %v745_v19 }
 0x104   : > { %v970_v28 = vadd.f32 %v968_v5, %v894_v26  ;;  %v966_v35 = vadd.f32 %v964_v53, %v890_v32  ;;  %v806_v37 = vmul.f32 %v1961_v49, %v1897_v40  ;;  %v807_v38 = vmul.f32 %v1980_v9, %v1901_v42  ;;  %1423 = vst.msk [vmem:[%s1957_s8 + $0x40] sm:$0xff] %vm972_vm4, %v898_v21 }
 0x105   : > { %v889_v39 = vmul.f32 %v880_v56, %v1907_v47  ;;  %1021 = vadd.xlane.f32.xlu0 %v1020_v22  ;;  %1424 = vst.msk [vmem:[%s1957_s8 + $0x48] sm:$0xff] %vm972_vm4, %v899_v50  ;;  %v969_v43 = vmul.f32 %v2024_v62, %v1944_v29  ;;  %v1038_v34 = vsel %vm972_vm4, %v822_v6, 0.0  ;;  %v1046_v36 = vmul.f32 %v822_v6, %v822_v6 }
 0x106   : > { %1425 = vst.msk [vmem:[%s1957_s8 + $0x50] sm:$0xff] %vm972_vm4, %v970_v28  ;;  %1427 = vst.msk [vmem:[%s1957_s8 + $0x60] sm:$0xff] %vm972_vm4, %v966_v35  ;;  %v895_v40 = vadd.f32 %v893_v15, %v815_v8  ;;  %v960_v42 = vmul.f32 %v2002_v33, %v1905_v44  ;;  %v886_v49 = vadd.f32 %v2019_v51, %v806_v37  ;;  %v1030_v45 = vsel %vm972_vm4, %v1026_v23, 0.0 }
 0x107   : > { %1039 = vadd.xlane.f32.xlu1 %v1038_v34  ;;  %v811_v9 = vadd.f32 %v2006_v30, %v1998_v27  ;;  %v961_v29 = vmul.f32 %v2024_v62, %v1907_v47  ;;  %v887_v48 = vadd.f32 %v885_v11, %v807_v38  ;;  %v965_v54 = vmul.f32 %v2024_v62, %v1917_v61 }
 0x108   : > { %v971_v46 = vadd.f32 %v969_v43, %v895_v40  ;;  %v962_v44 = vadd.f32 %v960_v42, %v886_v49  ;;  %v1048_v51 = vsel %vm972_vm4, %v1046_v36, 0.0  ;;  %v1041_v30 = vsel %vm972_vm4, %v823_v20, 0.0 }
 0x109   : > { %1031 = vadd.xlane.f32.xlu0 %v1030_v45  ;;  %v891_v33 = vadd.f32 %v889_v39, %v811_v9  ;;  %v963_v27 = vadd.f32 %v961_v29, %v887_v48  ;;  %v1047_v55 = vmul.f32 %v823_v20, %v823_v20  ;;  %v1059_v61 = vsel %vm972_vm4, %v898_v21, 0.0 }
 0x10a   : > { %1426 = vst.msk [vmem:[%s1957_s8 + $0x58] sm:$0xff] %vm972_vm4, %v971_v46  ;;  %1429 = vst.msk [vmem:[%s1957_s8 + $0x70] sm:$0xff] %vm972_vm4, %v962_v44  ;;  %v1067_v56 = vmul.f32 %v898_v21, %v898_v21  ;;  %v1062_v62 = vsel %vm972_vm4, %v899_v50, 0.0  ;;  %v1068_v63 = vmul.f32 %v899_v50, %v899_v50  ;;  %v1080_v0 = vsel %vm972_vm4, %v970_v28, 0.0 }
 0x10b   : > { %1049 = vadd.xlane.f32.xlu1 %v1048_v51  ;;  %v967_v47 = vadd.f32 %v965_v54, %v891_v33  ;;  %1430 = vst.msk [vmem:[%s1957_s8 + $0x78] sm:$0xff] %vm972_vm4, %v963_v27  ;;  %v1051_v58 = vsel %vm972_vm4, %v1047_v55, 0.0  ;;  %v1101_v41 = vsel %vm972_vm4, %v966_v35, 0.0  ;;  %v1083_v57 = vsel %vm972_vm4, %v971_v46, 0.0 }
 0x10c   : > { %v1069_v60 = vsel %vm972_vm4, %v1067_v56, 0.0  ;;  %v1072_v16 = vsel %vm972_vm4, %v1068_v63, 0.0  ;;  %v1122_v3 = vsel %vm972_vm4, %v962_v44, 0.0  ;;  %v1088_v7 = vmul.f32 %v970_v28, %v970_v28 }
 0x10d   : > { %1042 = vadd.xlane.f32.xlu0 %v1041_v30  ;;  %1428 = vst.msk [vmem:[%s1957_s8 + $0x68] sm:$0xff] %vm972_vm4, %v967_v47  ;;  %v1104_v2 = vsel %vm972_vm4, %v967_v47, 0.0  ;;  %v1109_v13 = vmul.f32 %v966_v35, %v966_v35  ;;  %v1125_v14 = vsel %vm972_vm4, %v963_v27, 0.0  ;;  %v1089_v1 = vmul.f32 %v971_v46, %v971_v46 }
 0x10e   : > { %v1090_v12 = vsel %vm972_vm4, %v1088_v7, 0.0  ;;  %v1130_v31 = vmul.f32 %v962_v44, %v962_v44  ;;  %v1110_v59 = vmul.f32 %v967_v47, %v967_v47  ;;  %v1131_v19 = vmul.f32 %v963_v27, %v963_v27 }
 0x10f   : > { %1060 = vadd.xlane.f32.xlu1 %v1059_v61  ;;  %v1111_v17 = vsel %vm972_vm4, %v1109_v13, 0.0  ;;  %v1093_v52 = vsel %vm972_vm4, %v1089_v1, 0.0 }
 0x110   : > { %v1132_v4 = vsel %vm972_vm4, %v1130_v31, 0.0  ;;  %v1114_v18 = vsel %vm972_vm4, %v1110_v59, 0.0  ;;  %v1135_v6 = vsel %vm972_vm4, %v1131_v19, 0.0 }
 0x111   : > { %1052 = vadd.xlane.f32.xlu0 %v1051_v58 }
 0x113   : > { %1070 = vadd.xlane.f32.xlu1 %v1069_v60 }
 0x115   : > { %1063 = vadd.xlane.f32.xlu0 %v1062_v62 }
 0x117   : > { %1081 = vadd.xlane.f32.xlu1 %v1080_v0 }
 0x119   : > { %1073 = vadd.xlane.f32.xlu0 %v1072_v16 }
 0x11b   : > { %1102 = vadd.xlane.f32.xlu1 %v1101_v41 }
 0x11d   : > { %1084 = vadd.xlane.f32.xlu0 %v1083_v57 }
 0x11f   : > { %1123 = vadd.xlane.f32.xlu1 %v1122_v3 }
 0x121   : > { %1105 = vadd.xlane.f32.xlu0 %v1104_v2 }
 0x123   : > { %1091 = vadd.xlane.f32.xlu1 %v1090_v12 }
 0x125   : > { %1126 = vadd.xlane.f32.xlu0 %v1125_v14 }
 0x127   : > { %1112 = vadd.xlane.f32.xlu1 %v1111_v17 }
 0x129   : > { %1094 = vadd.xlane.f32.xlu0 %v1093_v52 }
 0x12b   : > { %1133 = vadd.xlane.f32.xlu1 %v1132_v4 }
 0x12d   : > { %1115 = vadd.xlane.f32.xlu0 %v1114_v18 }
 0x131   : > { %1136 = vadd.xlane.f32.xlu0 %v1135_v6 }
 0x132   : > { %1621 = shalt.err (!%p1618_p5)
}
 0x133   : > { %s1622_s25 = scalar_lea.hbm %s2110_s13, 2048  ;;  %s1626_s29 = scalar_lea.hbm %s2175_s3, 4096 }
 0x134   : > { %p1623_p6 = scmp.ne.s32.totalorder %s2110_s13, %s1622_s25  ;;  %p1627_p10 = scmp.lt.s32.totalorder %s2110_s13, %s2175_s3 }
 0x135   : > { %p1628_p11 = scmp.lt.s32.totalorder %s1626_s29, %s1622_s25 }
 0x136   : > { %p1624_p7 = pnand %p1623_p6, %p1763_p4 }
 0x137   : > { %p1629_p12 = por %p1628_p11, %p1627_p10 }
 0x138   : > { %p1625_p9 = pneg %p1624_p7 }
 0x13a   : > { %p1630_p13 = pnand %p1629_p12, %p1625_p9 }
 0x13c   : > { %1633 = shalt.err (!%p1630_p13)
}
 0x13d   : > { %s1691_s11 = smov 128   ;;  %s1692_s12 = smov 8   ;;  %vm1140_vm5 = vcmask 7168  }
 0x13e   : > { %1528 = dma.vmem_to_hbm [thread:$0]  (%p1763_p4), %s2112_s10, 2048, %s2110_s13, %s2116_s14, %s1691_s11, %s1691_s11, %s1692_s12  }
 0x13f   : > { %s1437_s28 = sshll.u32 %s1782_s7, 4 }
 0x140   : > { %s283_s14 = scalar_lea.vmem %s2176_s4, %s1437_s28  ;;  %s292_s21 = scalar_lea.vmem %s2177_s5, %s1437_s28 }
 0x17a   : > { %v977_v20 = vpop.xlane.xlu0 %976 }
 0x17b   : > { %v998_v24 = vpop.xlane.xlu1 %997 }
 0x17c   : > { %v1002_v38 = vadd.f32 %v998_v24, %v977_v20 }
 0x17e   : > { %v987_v25 = vpop.xlane.xlu0 %986 }
 0x17f   : > { %v980_v26 = vpop.xlane.xlu1 %979 }
 0x182   : > { %v990_v32 = vpop.xlane.xlu0 %989 }
 0x183   : > { %v1008_v53 = vpop.xlane.xlu1 %1007 }
 0x184   : > { %v1012_v33 = vadd.f32 %v1008_v53, %v987_v25 }
 0x186   : > { %v1001_v5 = vpop.xlane.xlu0 %1000 }
 0x187   : > { %v1019_v15 = vpop.xlane.xlu1 %1018  ;;  %v1003_v42 = vadd.f32 %v1001_v5, %v980_v26 }
 0x188   : > { %v1023_v43 = vadd.f32 %v1019_v15, %v1002_v38 }
 0x18a   : > { %v1011_v10 = vpop.xlane.xlu0 %1010 }
 0x18b   : > { %v1013_v62 = vadd.f32 %v1011_v10, %v990_v32 }
 0x18c   : > { %v1029_v11 = vpop.xlane.xlu1 %1028 }
 0x18d   : > { %v1033_v30 = vadd.f32 %v1029_v11, %v1012_v33 }
 0x18e   : > { %v1022_v21 = vpop.xlane.xlu0 %1021 }
 0x18f   : > { %v1024_v29 = vadd.f32 %v1022_v21, %v1003_v42 }
 0x190   : > { %v1040_v50 = vpop.xlane.xlu1 %1039 }
 0x191   : > { %v1044_v36 = vadd.f32 %v1040_v50, %v1023_v43 }
 0x192   : > { %v1032_v8 = vpop.xlane.xlu0 %1031 }
 0x193   : > { %v1034_v41 = vadd.f32 %v1032_v8, %v1013_v62 }
 0x194   : > { %v1050_v22 = vpop.xlane.xlu1 %1049 }
 0x195   : > { %v1054_v56 = vadd.f32 %v1050_v22, %v1033_v30 }
 0x196   : > { %v1043_v23 = vpop.xlane.xlu0 %1042 }
 0x197   : > { %v1045_v48 = vadd.f32 %v1043_v23, %v1024_v29 }
 0x198   : > { %v1061_v28 = vpop.xlane.xlu1 %1060 }
 0x199   : > { %v1065_v49 = vadd.f32 %v1061_v28, %v1044_v36 }
 0x19a   : > { %v1053_v35 = vpop.xlane.xlu0 %1052 }
 0x19b   : > { %v1055_v7 = vadd.f32 %v1053_v35, %v1034_v41 }
 0x19c   : > { %v1071_v37 = vpop.xlane.xlu1 %1070 }
 0x19d   : > { %v1075_v63 = vadd.f32 %v1071_v37, %v1054_v56 }
 0x19e   : > { %v1064_v39 = vpop.xlane.xlu0 %1063 }
 0x19f   : > { %v1066_v51 = vadd.f32 %v1064_v39, %v1045_v48 }
 0x1a0   : > { %v1082_v34 = vpop.xlane.xlu1 %1081 }
 0x1a1   : > { %v1086_v45 = vadd.f32 %v1082_v34, %v1065_v49 }
 0x1a2   : > { %v1074_v40 = vpop.xlane.xlu0 %1073 }
 0x1a3   : > { %v1076_v13 = vadd.f32 %v1074_v40, %v1055_v7 }
 0x1a4   : > { %v1103_v9 = vpop.xlane.xlu1 %1102 }
 0x1a5   : > { %v1107_v54 = vadd.f32 %v1103_v9, %v1086_v45 }
 0x1a6   : > { %v1085_v46 = vpop.xlane.xlu0 %1084 }
 0x1a7   : > { %v1087_v55 = vadd.f32 %v1085_v46, %v1066_v51 }
 0x1a8   : > { %v1124_v44 = vpop.xlane.xlu1 %1123 }
 0x1a9   : > { %v1128_v27 = vadd.f32 %v1124_v44, %v1107_v54 }
 0x1aa   : > { %v1106_v47 = vpop.xlane.xlu0 %1105 }
 0x1ab   : > { %1141 = vst.msk [vmem:[%s283_s14] sm:$0xff] %vm1140_vm5, %v1128_v27  ;;  %v1108_v58 = vadd.f32 %v1106_v47, %v1087_v55 }
 0x1ac   : > { %v1092_v61 = vpop.xlane.xlu1 %1091 }
 0x1ad   : > { %v1096_v57 = vadd.f32 %v1092_v61, %v1075_v63 }
 0x1ae   : > { %v1127_v60 = vpop.xlane.xlu0 %1126 }
 0x1af   : > { %v1129_v0 = vadd.f32 %v1127_v60, %v1108_v58 }
 0x1b0   : > { %v1113_v16 = vpop.xlane.xlu1 %1112 }
 0x1b1   : > { %1142 = vst.msk [vmem:[%s283_s14 + $0x8] sm:$0xff] %vm1140_vm5, %v1129_v0  ;;  %v1117_v2 = vadd.f32 %v1113_v16, %v1096_v57 }
 0x1b2   : > { %v1095_v3 = vpop.xlane.xlu0 %1094 }
 0x1b3   : > { %v1097_v17 = vadd.f32 %v1095_v3, %v1076_v13 }
 0x1b4   : > { %v1134_v12 = vpop.xlane.xlu1 %1133 }
 0x1b5   : > { %v1138_v14 = vadd.f32 %v1134_v12, %v1117_v2 }
 0x1b6   : > { %v1116_v1 = vpop.xlane.xlu0 %1115 }
 0x1b7   : > { %1143 = vst.msk [vmem:[%s292_s21] sm:$0xff] %vm1140_vm5, %v1138_v14  ;;  %v1118_v31 = vadd.f32 %v1116_v1, %v1097_v17 }
 0x1ba   : > { %v1137_v52 = vpop.xlane.xlu0 %1136 }
 0x1bb   : > { %v1139_v59 = vadd.f32 %v1137_v52, %v1118_v31 }
 0x1bd   : > { %1144 = vst.msk [vmem:[%s292_s21 + $0x8] sm:$0xff] %vm1140_vm5, %v1139_v59 }
 0x1be PF: > { %p1534_p4 = scmp.ge.s32.totalorder %s1684_s23, 2  ;;  %s1199_s17 = sand.u32 1, %s1664_s18  }
 0x1bf   : > { %s1200_s24 = scalar_lea.sflag [#allocation3], %s1199_s17 }
 0x1c0   : > { %p1531_p0 = pnand %p1534_p4, %p1770_p8 }
 0x1c2   : > { %p1532_p1 = pneg %p1531_p0 }
 0x1c4   : > { %1659 = dma.done.wait (%p1532_p1), %s1200_s24, 2048  }
 0x1c5   : > { %1661 = vsyncadd (%p1532_p1), %s1200_s24, 4294965248  ;;  %s19_s23 = sadd.s32 1, %s1684_s23   ;;  %s2180_s18 = smov %s1668_s19 }
 0x1c6   : > { %p16_p2 = scmp.ge.s32.totalorder %s19_s23, 4   ;;  %s2181_s19 = smov %s1672_s20 }
 0x1c7   : > { %s2182_s20 = smov %s1776_s6  ;;  %s2183_s21 = smov %s1680_s22 }
 0x1c8   : > { %s2184_s22 = smov %s2186_s26  ;;  %18 = sbr.rel (!%p16_p2) target bundleno = 4 (0x4), region = 109 }
 0x1cd   :  { %1229 = vsyncpa [#allocation3], 1 }
 0x1ce   :  { %1231 = vsyncpa [#allocation3 + $0x1], 1 }

</bundles_post_ra>
